<compile_context>
chip_gen: v7x
topology: tpu7x:2x2x1
jax: 0.10.0
libtpu: 0.0.40
codegen_flags: <defaults>
</compile_context>

<pallas_src>
import math

import jax
import jax.numpy as jnp
from jax import lax
from jax.experimental import pallas as pl
from jax.experimental.pallas import tpu as pltpu


def _round_up(n, m):
    return ((n + m - 1) // m) * m


def _gelu_exact(x):
    # PyTorch nn.GELU() default: exact erf formulation.
    return 0.5 * x * (1.0 + lax.erf(x * (1.0 / math.sqrt(2.0))))


def output_kernel(x_ref, u_ref, c_ref, wvo_ref, w1_ref, b1_ref, w2_ref, b2_ref, out_ref):
    """One grid step = one batch tile of TB elements.

    x_ref   : (TB, P, D)   patch tokens in their source dtype (no wrapper cast)
    u_ref   : (1, D)       Wk-collapsed, 1/sqrt(D)-pre-scaled task-token query
    c_ref   : (1, D)       bv @ Wo + bo + task_token (all additive constants folded)
    wvo_ref : (D, D)       Wv @ Wo pre-composed, bf16
    w1/b1, w2/b2           fc1 / fc2 with hidden & output dims zero-padded to x128
    out_ref : (TB, out_pad) lane-dense f32 output slab
    """
    x = x_ref[...]                                    # (TB, P, D)
    xf = x.astype(jnp.float32)                        # no-op when x is already f32

    # --- single-query cross-attention, collapsed -----------------------------------
    # scores[b, p] = x[b, p, :] . u   (the q.bk term is softmax-invariant and dropped;
    # logits stay f32/exact per the review's correctness note on bf16 logits).
    u = u_ref[...]                                    # (1, D) f32, pre-scaled by 1/sqrt(D)
    s = jnp.sum(xf * u[None], axis=-1)                # (TB, P)
    s = s - jnp.max(s, axis=-1, keepdims=True)
    e = jnp.exp(s)
    attn = e * pl.reciprocal(jnp.sum(e, axis=-1, keepdims=True), approx=True)   # (TB, P)

    # z[b, :] = attn[b, :] @ x[b]   (attn rows sum to ~1, so bv folds into c below)
    z = jnp.sum(attn[:, :, None] * xf, axis=1)        # (TB, D) f32

    # --- fused V∘O projection + residual / bias constants (single MXU matmul) ------
    y = jnp.dot(z.astype(jnp.bfloat16), wvo_ref[...],
                preferred_element_type=jnp.float32) + c_ref[...]                # (TB, D)

    # --- MLP head: fc1 -> GELU -> (dropout = identity in eval) -> fc2 --------------
    h = jnp.dot(y.astype(jnp.bfloat16), w1_ref[...],
                preferred_element_type=jnp.float32) + b1_ref[...]               # (TB, Dh_pad)
    h = _gelu_exact(h)
    o = jnp.dot(h.astype(jnp.bfloat16), w2_ref[...],
                preferred_element_type=jnp.float32) + b2_ref[...]               # (TB, out_pad)

    out_ref[...] = o.astype(out_ref.dtype)


def _kernel_vmem_bytes(tb, P, D, dh_pad, out_pad, x_itemsize):
    """Conservative per-step VMEM estimate used for tile sizing."""
    weights = 2 * (D * D + D * dh_pad + dh_pad * out_pad)        # bf16, single-buffered
    consts = 4 * (2 * D + dh_pad + out_pad)                      # f32 u, c, biases
    x_tile = 2 * tb * P * D * x_itemsize                         # double-buffered x tile
    out_tile = 2 * tb * out_pad * 4                              # double-buffered output
    transients = 2 * tb * P * D * 4                              # f32 score / weighted-sum products
    acts = tb * (2 * D + dh_pad + out_pad) * 4                   # small activations
    return weights + consts + x_tile + out_tile + transients + acts


def _pick_batch_tile(B, P, D, dh_pad, out_pad, x_itemsize, budget=32 << 20):
    """Largest batch tile that (a) divides B, (b) keeps the output block sublane-aligned,
    (c) fits the VMEM budget, (d) leaves >= 2 grid steps when possible (v7x megacore)."""
    cands = [tb for tb in range(8, min(B, 512) + 1, 8) if B % tb == 0]
    if not cands:
        return B                                   # tiny / ragged batch: single full tile
    fit = [tb for tb in cands
           if _kernel_vmem_bytes(tb, P, D, dh_pad, out_pad, x_itemsize) <= budget]
    if not fit:
        return cands[0]                            # smallest legal tile
    multi = [tb for tb in fit if B // tb >= 2]     # >= 2 grid steps shards across v7x's 2 TCs
    return max(multi) if multi else max(fit)


def output_forward(x, params, *, batch_tile=None):
    """x: (B, P, D) float32.  params: dict of (in, out)-transposed weights/biases."""
    B, P, D = x.shape
    Dh = params["w1"].shape[1]
    out_dim = params["w2"].shape[1]
    dh_pad = _round_up(Dh, 128)                    # lane-dense fc1 activation / fc2 contraction
    out_pad = _round_up(out_dim, 128)              # lane-dense output slab
    scale = 1.0 / math.sqrt(D)

    # ---- batch-invariant algebra hoisted out of the kernel (shared task-token query) ----
    t = params["task_token"]                                   # (1, D) f32
    q = t @ params["wq"] + params["bq"]                        # (1, D)
    u = (q @ params["wk"].T) * scale                           # (1, D); q.bk dropped (softmax-invariant)
    wvo = (params["wv"] @ params["wo"]).astype(jnp.bfloat16)   # (D, D) fused V∘O projection
    c = params["bv"] @ params["wo"] + params["bo"] + t         # (1, D) folded constants + residual

    bf = jnp.bfloat16
    w1p = jnp.zeros((D, dh_pad), bf).at[:, :Dh].set(params["w1"].astype(bf))
    b1p = jnp.zeros((1, dh_pad), jnp.float32).at[:, :Dh].set(params["b1"])
    w2p = jnp.zeros((dh_pad, out_pad), bf).at[:Dh, :out_dim].set(params["w2"].astype(bf))
    b2p = jnp.zeros((1, out_pad), jnp.float32).at[:, :out_dim].set(params["b2"])

    x_itemsize = jnp.dtype(x.dtype).itemsize
    TB = batch_tile if batch_tile is not None else _pick_batch_tile(
        B, P, D, dh_pad, out_pad, x_itemsize)
    assert B % TB == 0, (B, TB)

    # Advisory cost estimate so XLA schedules/overlaps the custom call sensibly.
    cost = pl.CostEstimate(
        flops=4 * B * P * D + 2 * B * (D * D + D * dh_pad + dh_pad * out_pad),
        transcendentals=B * (P + dh_pad + 1),
        bytes_accessed=(B * P * D * x_itemsize
                        + 2 * (D * D + D * dh_pad + dh_pad * out_pad)
                        + 4 * (2 * D + dh_pad + out_pad)
                        + B * out_pad * 4),
    )

    def build_call(single_buffer_invariants):
        if single_buffer_invariants:
            # Grid-invariant operands are DMA'd once; a single buffer halves their VMEM cost.
            inv = lambda shape: pl.BlockSpec(shape, lambda i: (0, 0),
                                             pipeline_mode=pl.Buffered(1))
        else:
            inv = lambda shape: pl.BlockSpec(shape, lambda i: (0, 0))
        in_specs = [
            pl.BlockSpec((TB, P, D), lambda i: (i, 0, 0)),      # x tile (source dtype)
            inv((1, D)),                                        # u
            inv((1, D)),                                        # c (bv@Wo + bo + task token)
            inv((D, D)),                                        # Wvo
            inv((D, dh_pad)), inv((1, dh_pad)),                 # fc1
            inv((dh_pad, out_pad)), inv((1, out_pad)),          # fc2 (padded)
        ]
        return pl.pallas_call(
            output_kernel,
            out_shape=jax.ShapeDtypeStruct((B, out_pad), jnp.float32),
            grid_spec=pltpu.PrefetchScalarGridSpec(
                num_scalar_prefetch=0,
                grid=(B // TB,),
                in_specs=in_specs,
                out_specs=pl.BlockSpec((TB, out_pad), lambda i: (i, 0)),
            ),
            compiler_params=pltpu.CompilerParams(
                dimension_semantics=("parallel",),          # >=2 tiles => megacore on v7x
                vmem_limit_bytes=48 << 20,                  # above v5e/v6e defaults, < v7x 64 MiB
            ),
            cost_estimate=cost,
        )

    args = (x, u, c, wvo, w1p, b1p, w2p, b2p)
    try:
        out = build_call(True)(*args)
    except Exception:
        # Fallback: default (double) buffering for invariant operands.
        out = build_call(False)(*args)

    # Slice away the lane padding; restore the module's (B, 1, out_dim) shape.
    return out[:, :out_dim].reshape(B, 1, out_dim)


def reference_forward(x, p):
    """Pure-JAX f32 reference matching the PyTorch module (eval mode)."""
    B, P, D = x.shape
    t = jnp.broadcast_to(p["task_token"][None], (B, 1, D))
    q = t @ p["wq"] + p["bq"]
    k = x @ p["wk"] + p["bk"]
    v = x @ p["wv"] + p["bv"]
    scores = jnp.einsum("bqd,bkd->bqk", q, k) / math.sqrt(D)
    attn = jax.nn.softmax(scores, axis=-1)
    y = jnp.einsum("bqk,bkd->bqd", attn, v) @ p["wo"] + p["bo"]
    y = y + t
    h = jax.nn.gelu(y @ p["w1"] + p["b1"], approximate=False)
    return h @ p["w2"] + p["b2"]


def init_params(key, D, out_dim, init_std=0.02):
    Dh = D // 4
    ks = jax.random.split(key, 16)

    def linear(kw, kb, fan_in, fan_out):
        bound = 1.0 / math.sqrt(fan_in)
        w = jax.random.uniform(kw, (fan_in, fan_out), jnp.float32, -bound, bound)
        b = jax.random.uniform(kb, (1, fan_out), jnp.float32, -bound, bound)
        return w, b

    wq, bq = linear(ks[0], ks[1], D, D)
    wk, bk = linear(ks[2], ks[3], D, D)
    wv, bv = linear(ks[4], ks[5], D, D)
    wo, bo = linear(ks[6], ks[7], D, D)
    w1, b1 = linear(ks[8], ks[9], D, Dh)
    w2, b2 = linear(ks[10], ks[11], Dh, out_dim)
    # trunc_normal_(std=init_std) approximated by a clipped normal (init-time only).
    tt = jnp.clip(init_std * jax.random.normal(ks[12], (1, D), jnp.float32),
                  -2 * init_std, 2 * init_std)
    return dict(task_token=tt,
                wq=wq, bq=bq, wk=wk, bk=bk, wv=wv, bv=bv, wo=wo, bo=bo,
                w1=w1, b1=b1, w2=w2, b2=b2)


if __name__ == "__main__":
    B, P, D, OUT = 16, 8, 32, 8
    key = jax.random.PRNGKey(0)
    kx, kp = jax.random.split(key)
    x = jax.random.normal(kx, (B, P, D), jnp.float32)
    params = init_params(kp, D, OUT)

    # VMEM-aware tile picker chooses TB=8 here -> grid=(2,), exercising the multi-tile path.
    y = output_forward(x, params)
    y = jax.block_until_ready(y)

    y_ref = reference_forward(x, params)
    assert y.shape == (B, 1, OUT), y.shape
    err = float(jnp.max(jnp.abs(y - y_ref)))
    # bf16 MXU operands on the projection/MLP path + approx softmax reciprocal.
    assert err < 5e-2, f"max abs err {err}"

    print("KERNEL_OK")
</pallas_src>

<mosaic_0001>
module attributes {stable_mosaic.version = 11 : i64} {
  func.func @output_kernel(%arg0: i32, %arg1: memref<8x8x32xf32, #tpu.memory_space<vmem>>, %arg2: memref<1x32xf32, #tpu.memory_space<vmem>>, %arg3: memref<1x32xf32, #tpu.memory_space<vmem>>, %arg4: memref<32x32xbf16, #tpu.memory_space<vmem>>, %arg5: memref<32x128xbf16, #tpu.memory_space<vmem>>, %arg6: memref<1x128xf32, #tpu.memory_space<vmem>>, %arg7: memref<128x128xbf16, #tpu.memory_space<vmem>>, %arg8: memref<1x128xf32, #tpu.memory_space<vmem>>, %arg9: memref<8x128xf32, #tpu.memory_space<vmem>>) attributes {dimension_semantics = [#tpu.dimension_semantics<parallel>], iteration_bounds = array<i64: 2>, scalar_prefetch = 0 : i64, scratch_operands = 0 : i64, tpu.core_type = #tpu.core_type<tc>, window_params = [{transform_indices = @transform_0, window_bounds = array<i64: 8, 8, 32>}, {pipeline_mode = #tpu.pipeline_mode<synchronous>, transform_indices = @transform_1, window_bounds = array<i64: 1, 32>}, {pipeline_mode = #tpu.pipeline_mode<synchronous>, transform_indices = @transform_2, window_bounds = array<i64: 1, 32>}, {pipeline_mode = #tpu.pipeline_mode<synchronous>, transform_indices = @transform_3, window_bounds = array<i64: 32, 32>}, {pipeline_mode = #tpu.pipeline_mode<synchronous>, transform_indices = @transform_4, window_bounds = array<i64: 32, 128>}, {pipeline_mode = #tpu.pipeline_mode<synchronous>, transform_indices = @transform_5, window_bounds = array<i64: 1, 128>}, {pipeline_mode = #tpu.pipeline_mode<synchronous>, transform_indices = @transform_6, window_bounds = array<i64: 128, 128>}, {pipeline_mode = #tpu.pipeline_mode<synchronous>, transform_indices = @transform_7, window_bounds = array<i64: 1, 128>}, {transform_indices = @transform_8, window_bounds = array<i64: 8, 128>}]} {
    %c0 = arith.constant 0 : index
    %c0_0 = arith.constant 0 : index
    %c0_1 = arith.constant 0 : index
    %0 = vector.load %arg1[%c0, %c0_0, %c0_1] : memref<8x8x32xf32, #tpu.memory_space<vmem>>, vector<8x8x32xf32>
    %c0_2 = arith.constant 0 : index
    %c0_3 = arith.constant 0 : index
    %1 = vector.load %arg2[%c0_2, %c0_3] : memref<1x32xf32, #tpu.memory_space<vmem>>, vector<1x32xf32>
    %2 = vector.shape_cast %1 : vector<1x32xf32> to vector<1x1x32xf32>
    %3 = vector.broadcast %2 : vector<1x1x32xf32> to vector<8x8x32xf32>
    %4 = arith.mulf %0, %3 : vector<8x8x32xf32>
    %cst = arith.constant dense<0.000000e+00> : vector<8x8xf32>
    %5 = vector.multi_reduction <add>, %4, %cst [2] : vector<8x8x32xf32> to vector<8x8xf32>
    %cst_4 = arith.constant dense<0xFF800000> : vector<8xf32>
    %6 = vector.multi_reduction <maximumf>, %5, %cst_4 [1] : vector<8x8xf32> to vector<8xf32>
    %7 = vector.shape_cast %6 : vector<8xf32> to vector<8x1xf32>
    %8 = vector.broadcast %7 : vector<8x1xf32> to vector<8x8xf32>
    %9 = arith.subf %5, %8 : vector<8x8xf32>
    %10 = math.exp %9 : vector<8x8xf32>
    %cst_5 = arith.constant dense<0.000000e+00> : vector<8xf32>
    %11 = vector.multi_reduction <add>, %10, %cst_5 [1] : vector<8x8xf32> to vector<8xf32>
    %12 = vector.shape_cast %11 : vector<8xf32> to vector<8x1xf32>
    %13 = tpu.reciprocal %12 {approx = true} : vector<8x1xf32> -> vector<8x1xf32>
    %14 = vector.broadcast %13 : vector<8x1xf32> to vector<8x8xf32>
    %15 = arith.mulf %10, %14 : vector<8x8xf32>
    %16 = vector.shape_cast %15 : vector<8x8xf32> to vector<8x8x1xf32>
    %17 = vector.broadcast %16 : vector<8x8x1xf32> to vector<8x8x32xf32>
    %18 = arith.mulf %17, %0 : vector<8x8x32xf32>
    %cst_6 = arith.constant dense<0.000000e+00> : vector<8x32xf32>
    %19 = vector.multi_reduction <add>, %18, %cst_6 [1] : vector<8x8x32xf32> to vector<8x32xf32>
    %20 = arith.truncf %19 : vector<8x32xf32> to vector<8x32xbf16>
    %c0_7 = arith.constant 0 : index
    %c0_8 = arith.constant 0 : index
    %21 = vector.load %arg4[%c0_7, %c0_8] : memref<32x32xbf16, #tpu.memory_space<vmem>>, vector<32x32xbf16>
    %cst_9 = arith.constant dense<0.000000e+00> : vector<8x32xf32>
    %22 = tpu.matmul %20, %21, %cst_9 {dimension_numbers = #tpu.dot_dimension_numbers<[1], [0], [0], [1], [0, 0, 1, 1], [], []>} : vector<8x32xbf16>, vector<32x32xbf16>, vector<8x32xf32> -> vector<8x32xf32>
    %c0_10 = arith.constant 0 : index
    %c0_11 = arith.constant 0 : index
    %23 = vector.load %arg3[%c0_10, %c0_11] : memref<1x32xf32, #tpu.memory_space<vmem>>, vector<1x32xf32>
    %24 = vector.broadcast %23 : vector<1x32xf32> to vector<8x32xf32>
    %25 = arith.addf %22, %24 : vector<8x32xf32>
    %26 = arith.truncf %25 : vector<8x32xf32> to vector<8x32xbf16>
    %c0_12 = arith.constant 0 : index
    %c0_13 = arith.constant 0 : index
    %27 = vector.load %arg5[%c0_12, %c0_13] : memref<32x128xbf16, #tpu.memory_space<vmem>>, vector<32x128xbf16>
    %cst_14 = arith.constant dense<0.000000e+00> : vector<8x128xf32>
    %28 = tpu.matmul %26, %27, %cst_14 {dimension_numbers = #tpu.dot_dimension_numbers<[1], [0], [0], [1], [0, 0, 1, 1], [], []>} : vector<8x32xbf16>, vector<32x128xbf16>, vector<8x128xf32> -> vector<8x128xf32>
    %c0_15 = arith.constant 0 : index
    %c0_16 = arith.constant 0 : index
    %29 = vector.load %arg6[%c0_15, %c0_16] : memref<1x128xf32, #tpu.memory_space<vmem>>, vector<1x128xf32>
    %30 = vector.broadcast %29 : vector<1x128xf32> to vector<8x128xf32>
    %31 = arith.addf %28, %30 : vector<8x128xf32>
    %cst_17 = arith.constant 5.000000e-01 : f32
    %32 = vector.broadcast %cst_17 : f32 to vector<8x128xf32>
    %33 = arith.mulf %32, %31 : vector<8x128xf32>
    %cst_18 = arith.constant 0.707106769 : f32
    %34 = vector.broadcast %cst_18 : f32 to vector<8x128xf32>
    %35 = arith.mulf %31, %34 : vector<8x128xf32>
    %36 = math.erf %35 : vector<8x128xf32>
    %cst_19 = arith.constant 1.000000e+00 : f32
    %37 = vector.broadcast %cst_19 : f32 to vector<8x128xf32>
    %38 = arith.addf %37, %36 : vector<8x128xf32>
    %39 = arith.mulf %33, %38 : vector<8x128xf32>
    %40 = arith.truncf %39 : vector<8x128xf32> to vector<8x128xbf16>
    %c0_20 = arith.constant 0 : index
    %c0_21 = arith.constant 0 : index
    %41 = vector.load %arg7[%c0_20, %c0_21] : memref<128x128xbf16, #tpu.memory_space<vmem>>, vector<128x128xbf16>
    %cst_22 = arith.constant dense<0.000000e+00> : vector<8x128xf32>
    %42 = tpu.matmul %40, %41, %cst_22 {dimension_numbers = #tpu.dot_dimension_numbers<[1], [0], [0], [1], [0, 0, 1, 1], [], []>} : vector<8x128xbf16>, vector<128x128xbf16>, vector<8x128xf32> -> vector<8x128xf32>
    %c0_23 = arith.constant 0 : index
    %c0_24 = arith.constant 0 : index
    %43 = vector.load %arg8[%c0_23, %c0_24] : memref<1x128xf32, #tpu.memory_space<vmem>>, vector<1x128xf32>
    %44 = vector.broadcast %43 : vector<1x128xf32> to vector<8x128xf32>
    %45 = arith.addf %42, %44 : vector<8x128xf32>
    %c0_25 = arith.constant 0 : index
    %c0_26 = arith.constant 0 : index
    %46 = vector.load %arg9[%c0_25, %c0_26] : memref<8x128xf32, #tpu.memory_space<vmem>>, vector<8x128xf32>
    tpu.vector_store %arg9[%c0_25, %c0_26], %45 {strides = array<i32>} : memref<8x128xf32, #tpu.memory_space<vmem>>, vector<8x128xf32>,
    return
  }
  func.func @transform_0(%arg0: i32) -> (i32, i32, i32) {
    %c0_i32 = arith.constant 0 : i32
    %c0_i32_0 = arith.constant 0 : i32
    %c0_i32_1 = arith.constant 0 : i32
    return %arg0, %c0_i32, %c0_i32_0 : i32, i32, i32
  }
  func.func @transform_1(%arg0: i32) -> (i32, i32) {
    %c0_i32 = arith.constant 0 : i32
    %c0_i32_0 = arith.constant 0 : i32
    %c0_i32_1 = arith.constant 0 : i32
    return %c0_i32, %c0_i32_0 : i32, i32
  }
  func.func @transform_2(%arg0: i32) -> (i32, i32) {
    %c0_i32 = arith.constant 0 : i32
    %c0_i32_0 = arith.constant 0 : i32
    %c0_i32_1 = arith.constant 0 : i32
    return %c0_i32, %c0_i32_0 : i32, i32
  }
  func.func @transform_3(%arg0: i32) -> (i32, i32) {
    %c0_i32 = arith.constant 0 : i32
    %c0_i32_0 = arith.constant 0 : i32
    %c0_i32_1 = arith.constant 0 : i32
    return %c0_i32, %c0_i32_0 : i32, i32
  }
  func.func @transform_4(%arg0: i32) -> (i32, i32) {
    %c0_i32 = arith.constant 0 : i32
    %c0_i32_0 = arith.constant 0 : i32
    %c0_i32_1 = arith.constant 0 : i32
    return %c0_i32, %c0_i32_0 : i32, i32
  }
  func.func @transform_5(%arg0: i32) -> (i32, i32) {
    %c0_i32 = arith.constant 0 : i32
    %c0_i32_0 = arith.constant 0 : i32
    %c0_i32_1 = arith.constant 0 : i32
    return %c0_i32, %c0_i32_0 : i32, i32
  }
  func.func @transform_6(%arg0: i32) -> (i32, i32) {
    %c0_i32 = arith.constant 0 : i32
    %c0_i32_0 = arith.constant 0 : i32
    %c0_i32_1 = arith.constant 0 : i32
    return %c0_i32, %c0_i32_0 : i32, i32
  }
  func.func @transform_7(%arg0: i32) -> (i32, i32) {
    %c0_i32 = arith.constant 0 : i32
    %c0_i32_0 = arith.constant 0 : i32
    %c0_i32_1 = arith.constant 0 : i32
    return %c0_i32, %c0_i32_0 : i32, i32
  }
  func.func @transform_8(%arg0: i32) -> (i32, i32) {
    %c0_i32 = arith.constant 0 : i32
    %c0_i32_0 = arith.constant 0 : i32
    return %arg0, %c0_i32 : i32, i32
  }
}

module attributes {stable_mosaic.version = 11 : i64} {
  func.func @output_kernel(%arg0: i32, %arg1: memref<8x8x32xf32, #tpu.memory_space<vmem>>, %arg2: memref<1x32xf32, #tpu.memory_space<vmem>>, %arg3: memref<1x32xf32, #tpu.memory_space<vmem>>, %arg4: memref<32x32xbf16, #tpu.memory_space<vmem>>, %arg5: memref<32x128xbf16, #tpu.memory_space<vmem>>, %arg6: memref<1x128xf32, #tpu.memory_space<vmem>>, %arg7: memref<128x128xbf16, #tpu.memory_space<vmem>>, %arg8: memref<1x128xf32, #tpu.memory_space<vmem>>, %arg9: memref<8x128xf32, #tpu.memory_space<vmem>>) attributes {dimension_semantics = [#tpu.dimension_semantics<parallel>], iteration_bounds = array<i64: 2>, scalar_prefetch = 0 : i64, scratch_operands = 0 : i64, tpu.core_type = #tpu.core_type<tc>, window_params = [{transform_indices = @transform_0, window_bounds = array<i64: 8, 8, 32>}, {pipeline_mode = #tpu.pipeline_mode<synchronous>, transform_indices = @transform_1, window_bounds = array<i64: 1, 32>}, {pipeline_mode = #tpu.pipeline_mode<synchronous>, transform_indices = @transform_2, window_bounds = array<i64: 1, 32>}, {pipeline_mode = #tpu.pipeline_mode<synchronous>, transform_indices = @transform_3, window_bounds = array<i64: 32, 32>}, {pipeline_mode = #tpu.pipeline_mode<synchronous>, transform_indices = @transform_4, window_bounds = array<i64: 32, 128>}, {pipeline_mode = #tpu.pipeline_mode<synchronous>, transform_indices = @transform_5, window_bounds = array<i64: 1, 128>}, {pipeline_mode = #tpu.pipeline_mode<synchronous>, transform_indices = @transform_6, window_bounds = array<i64: 128, 128>}, {pipeline_mode = #tpu.pipeline_mode<synchronous>, transform_indices = @transform_7, window_bounds = array<i64: 1, 128>}, {transform_indices = @transform_8, window_bounds = array<i64: 8, 128>}]} {
    %c0 = arith.constant 0 : index
    %c0_0 = arith.constant 0 : index
    %c0_1 = arith.constant 0 : index
    %0 = vector.load %arg1[%c0, %c0_0, %c0_1] : memref<8x8x32xf32, #tpu.memory_space<vmem>>, vector<8x8x32xf32>
    %c0_2 = arith.constant 0 : index
    %c0_3 = arith.constant 0 : index
    %1 = vector.load %arg2[%c0_2, %c0_3] : memref<1x32xf32, #tpu.memory_space<vmem>>, vector<1x32xf32>
    %2 = vector.shape_cast %1 : vector<1x32xf32> to vector<1x1x32xf32>
    %3 = vector.broadcast %2 : vector<1x1x32xf32> to vector<8x8x32xf32>
    %4 = arith.mulf %0, %3 : vector<8x8x32xf32>
    %cst = arith.constant dense<0.000000e+00> : vector<8x8xf32>
    %5 = vector.multi_reduction <add>, %4, %cst [2] : vector<8x8x32xf32> to vector<8x8xf32>
    %cst_4 = arith.constant dense<0xFF800000> : vector<8xf32>
    %6 = vector.multi_reduction <maximumf>, %5, %cst_4 [1] : vector<8x8xf32> to vector<8xf32>
    %7 = vector.shape_cast %6 : vector<8xf32> to vector<8x1xf32>
    %8 = vector.broadcast %7 : vector<8x1xf32> to vector<8x8xf32>
    %9 = arith.subf %5, %8 : vector<8x8xf32>
    %10 = math.exp %9 : vector<8x8xf32>
    %cst_5 = arith.constant dense<0.000000e+00> : vector<8xf32>
    %11 = vector.multi_reduction <add>, %10, %cst_5 [1] : vector<8x8xf32> to vector<8xf32>
    %12 = vector.shape_cast %11 : vector<8xf32> to vector<8x1xf32>
    %13 = tpu.reciprocal %12 {approx = true} : vector<8x1xf32> -> vector<8x1xf32>
    %14 = vector.broadcast %13 : vector<8x1xf32> to vector<8x8xf32>
    %15 = arith.mulf %10, %14 : vector<8x8xf32>
    %16 = vector.shape_cast %15 : vector<8x8xf32> to vector<8x8x1xf32>
    %17 = vector.broadcast %16 : vector<8x8x1xf32> to vector<8x8x32xf32>
    %18 = arith.mulf %17, %0 : vector<8x8x32xf32>
    %cst_6 = arith.constant dense<0.000000e+00> : vector<8x32xf32>
    %19 = vector.multi_reduction <add>, %18, %cst_6 [1] : vector<8x8x32xf32> to vector<8x32xf32>
    %20 = arith.truncf %19 : vector<8x32xf32> to vector<8x32xbf16>
    %c0_7 = arith.constant 0 : index
    %c0_8 = arith.constant 0 : index
    %21 = vector.load %arg4[%c0_7, %c0_8] : memref<32x32xbf16, #tpu.memory_space<vmem>>, vector<32x32xbf16>
    %cst_9 = arith.constant dense<0.000000e+00> : vector<8x32xf32>
    %22 = tpu.matmul %20, %21, %cst_9 {dimension_numbers = #tpu.dot_dimension_numbers<[1], [0], [0], [1], [0, 0, 1, 1], [], []>} : vector<8x32xbf16>, vector<32x32xbf16>, vector<8x32xf32> -> vector<8x32xf32>
    %c0_10 = arith.constant 0 : index
    %c0_11 = arith.constant 0 : index
    %23 = vector.load %arg3[%c0_10, %c0_11] : memref<1x32xf32, #tpu.memory_space<vmem>>, vector<1x32xf32>
    %24 = vector.broadcast %23 : vector<1x32xf32> to vector<8x32xf32>
    %25 = arith.addf %22, %24 : vector<8x32xf32>
    %26 = arith.truncf %25 : vector<8x32xf32> to vector<8x32xbf16>
    %c0_12 = arith.constant 0 : index
    %c0_13 = arith.constant 0 : index
    %27 = vector.load %arg5[%c0_12, %c0_13] : memref<32x128xbf16, #tpu.memory_space<vmem>>, vector<32x128xbf16>
    %cst_14 = arith.constant dense<0.000000e+00> : vector<8x128xf32>
    %28 = tpu.matmul %26, %27, %cst_14 {dimension_numbers = #tpu.dot_dimension_numbers<[1], [0], [0], [1], [0, 0, 1, 1], [], []>} : vector<8x32xbf16>, vector<32x128xbf16>, vector<8x128xf32> -> vector<8x128xf32>
    %c0_15 = arith.constant 0 : index
    %c0_16 = arith.constant 0 : index
    %29 = vector.load %arg6[%c0_15, %c0_16] : memref<1x128xf32, #tpu.memory_space<vmem>>, vector<1x128xf32>
    %30 = vector.broadcast %29 : vector<1x128xf32> to vector<8x128xf32>
    %31 = arith.addf %28, %30 : vector<8x128xf32>
    %cst_17 = arith.constant 5.000000e-01 : f32
    %32 = vector.broadcast %cst_17 : f32 to vector<8x128xf32>
    %33 = arith.mulf %32, %31 : vector<8x128xf32>
    %cst_18 = arith.constant 0.707106769 : f32
    %34 = vector.broadcast %cst_18 : f32 to vector<8x128xf32>
    %35 = arith.mulf %31, %34 : vector<8x128xf32>
    %36 = math.erf %35 : vector<8x128xf32>
    %cst_19 = arith.constant 1.000000e+00 : f32
    %37 = vector.broadcast %cst_19 : f32 to vector<8x128xf32>
    %38 = arith.addf %37, %36 : vector<8x128xf32>
    %39 = arith.mulf %33, %38 : vector<8x128xf32>
    %40 = arith.truncf %39 : vector<8x128xf32> to vector<8x128xbf16>
    %c0_20 = arith.constant 0 : index
    %c0_21 = arith.constant 0 : index
    %41 = vector.load %arg7[%c0_20, %c0_21] : memref<128x128xbf16, #tpu.memory_space<vmem>>, vector<128x128xbf16>
    %cst_22 = arith.constant dense<0.000000e+00> : vector<8x128xf32>
    %42 = tpu.matmul %40, %41, %cst_22 {dimension_numbers = #tpu.dot_dimension_numbers<[1], [0], [0], [1], [0, 0, 1, 1], [], []>} : vector<8x128xbf16>, vector<128x128xbf16>, vector<8x128xf32> -> vector<8x128xf32>
    %c0_23 = arith.constant 0 : index
    %c0_24 = arith.constant 0 : index
    %43 = vector.load %arg8[%c0_23, %c0_24] : memref<1x128xf32, #tpu.memory_space<vmem>>, vector<1x128xf32>
    %44 = vector.broadcast %43 : vector<1x128xf32> to vector<8x128xf32>
    %45 = arith.addf %42, %44 : vector<8x128xf32>
    %c0_25 = arith.constant 0 : index
    %c0_26 = arith.constant 0 : index
    %46 = vector.load %arg9[%c0_25, %c0_26] : memref<8x128xf32, #tpu.memory_space<vmem>>, vector<8x128xf32>
    tpu.vector_store %arg9[%c0_25, %c0_26], %45 {strides = array<i32>} : memref<8x128xf32, #tpu.memory_space<vmem>>, vector<8x128xf32>,
    return
  }
  func.func @transform_0(%arg0: i32) -> (i32, i32, i32) {
    %c0_i32 = arith.constant 0 : i32
    %c0_i32_0 = arith.constant 0 : i32
    %c0_i32_1 = arith.constant 0 : i32
    return %arg0, %c0_i32, %c0_i32_0 : i32, i32, i32
  }
  func.func @transform_1(%arg0: i32) -> (i32, i32) {
    %c0_i32 = arith.constant 0 : i32
    %c0_i32_0 = arith.constant 0 : i32
    %c0_i32_1 = arith.constant 0 : i32
    return %c0_i32, %c0_i32_0 : i32, i32
  }
  func.func @transform_2(%arg0: i32) -> (i32, i32) {
    %c0_i32 = arith.constant 0 : i32
    %c0_i32_0 = arith.constant 0 : i32
    %c0_i32_1 = arith.constant 0 : i32
    return %c0_i32, %c0_i32_0 : i32, i32
  }
  func.func @transform_3(%arg0: i32) -> (i32, i32) {
    %c0_i32 = arith.constant 0 : i32
    %c0_i32_0 = arith.constant 0 : i32
    %c0_i32_1 = arith.constant 0 : i32
    return %c0_i32, %c0_i32_0 : i32, i32
  }
  func.func @transform_4(%arg0: i32) -> (i32, i32) {
    %c0_i32 = arith.constant 0 : i32
    %c0_i32_0 = arith.constant 0 : i32
    %c0_i32_1 = arith.constant 0 : i32
    return %c0_i32, %c0_i32_0 : i32, i32
  }
  func.func @transform_5(%arg0: i32) -> (i32, i32) {
    %c0_i32 = arith.constant 0 : i32
    %c0_i32_0 = arith.constant 0 : i32
    %c0_i32_1 = arith.constant 0 : i32
    return %c0_i32, %c0_i32_0 : i32, i32
  }
  func.func @transform_6(%arg0: i32) -> (i32, i32) {
    %c0_i32 = arith.constant 0 : i32
    %c0_i32_0 = arith.constant 0 : i32
    %c0_i32_1 = arith.constant 0 : i32
    return %c0_i32, %c0_i32_0 : i32, i32
  }
  func.func @transform_7(%arg0: i32) -> (i32, i32) {
    %c0_i32 = arith.constant 0 : i32
    %c0_i32_0 = arith.constant 0 : i32
    %c0_i32_1 = arith.constant 0 : i32
    return %c0_i32, %c0_i32_0 : i32, i32
  }
  func.func @transform_8(%arg0: i32) -> (i32, i32) {
    %c0_i32 = arith.constant 0 : i32
    %c0_i32_0 = arith.constant 0 : i32
    return %arg0, %c0_i32 : i32, i32
  }
}

</mosaic_0001>

<bundles_post_ra>
// kernel: tpu_custom_call.1
= control target key start
LH: loop header
LB: loop body
LE: loop exit
PB: predicated region body
PF: predicated region fallthrough
CT: control target
= control target key end

     0   :  { %13 = vsyncpa [#allocation3], 0  ;;  %s2054_s0 = inlined_call_operand.hbm [shape: f32[16,8,32], index: 0, kind: input, shape index: {}]   ;;  %s2055_s1 = inlined_call_operand.vmem [shape: f32[1,32], index: 1, kind: input, shape index: {}]   ;;  %s2056_s2 = inlined_call_operand.vmem [shape: f32[1,32], index: 2, kind: input, shape index: {}]   ;;  %s2057_s3 = inlined_call_operand.hbm [shape: bf16[32,32], index: 3, kind: input, shape index: {}]   ;;  %s2058_s4 = inlined_call_operand.hbm [shape: bf16[32,128], index: 4, kind: input, shape index: {}]   ;;  %s2059_s5 = inlined_call_operand.vmem [shape: f32[1,128], index: 5, kind: input, shape index: {}]   ;;  %s2060_s6 = inlined_call_operand.hbm [shape: bf16[128,128], index: 6, kind: input, shape index: {}]   ;;  %s2061_s7 = inlined_call_operand.vmem [shape: f32[1,128], index: 7, kind: input, shape index: {}]   ;;  %s2062_s8 = inlined_call_operand.hbm [shape: f32[16,128], index: 8, kind: output, shape index: {}]  }
   0x1   :  { %15 = vsyncpa [#allocation3 + $0x1], 0 }
   0x2   :  { %16 = vsyncpa [#allocation6], 0 }
   0x3   :  { %17 = vsyncpa [#allocation9], 0 }
   0x4   :  { %18 = vsyncpa [#allocation4], 0 }
   0x5   :  { %20 = vsyncpa [#allocation4 + $0x1], 0  ;;  %s1623_s27 = smov 0   ;;  %s1625_s28 = smov 0  }
   0x6   :  { %s1627_s29 = smov 0   ;;  %s1629_s30 = smov 0  }
   0x7 LB: > { %2068 = sst [smem:[#allocation15_spill]] %s1552_s27  ;;  %s1644_s9 = sadd.s32 4294967295, %s1564_s30   ;;  %s1564_s30 = sphi %s1629_s30, %s2091_s30   ;;  %s1560_s29 = sphi %s1627_s29, %s2090_s29   ;;  %s1556_s28 = sphi %s1625_s28, %s2089_s28   ;;  %s1552_s27 = sphi %s1623_s27, %s2088_s27  }
   0x8   : > { %s1169_s10 = sadd.s32 4294967294, %s1564_s30   ;;  %p46_p0 = scmp.ne.s32.totalorder %s1556_s28, %s1552_s27 }
   0x9   : > { %p2063_p1 = scmp.eq.s32.totalorder %s1644_s9, 0  ;;  %p223_p3 = scmp.eq.s32.totalorder %s1169_s10, 1 }
   0xa   : > { %p1170_p5 = scmp.ge.s32.totalorder %s1564_s30, 1  ;;  %p230_p7 = scmp.lt.s32.totalorder %s1564_s30, 3 }
   0xb   : > { %p1653_p4 = por %p2063_p1, %p46_p0  ;;  %p1658_p6 = por %p223_p3, %p46_p0 }
   0xc   : > { %p1663_p8 = pnand %p1170_p5, %p230_p7  ;;  %s1566_s14 = smov [#allocation5]  }
   0xd   : > { %s2069_s11 = scalar_select %p1653_p4, 1, 0 }
   0xe   : > { %s2070_s12 = scalar_select %p1658_p6, 1, 0 }
   0xf   : > { %s2072_s13 = scalar_select %p1663_p8, 1, 0 }
  0x10   : > { %2071 = sst [smem:[#allocation16_spill]] %s2070_s12  ;;  %s248_s15 = sshll.u32 %s1566_s14, 4  ;;  %s1667_s15 = int_to_ptr.vmem [resolvable:$true] %s248_s15 }
  0x11   : > { %p1274_p9 = pneg %p1663_p8  ;;  %s1567_s17 = smov [#allocation7]  }
  0x12   : > { %s261_s18 = sshll.u32 %s1567_s17, 4  ;;  %s1568_s19 = smov [#allocation8]   ;;  %s1678_s18 = int_to_ptr.vmem [resolvable:$true] %s261_s18 }
  0x13   : > { %p1674_p11 = pnand %p1274_p9, %p2063_p1  ;;  %s1680_s20 = sshll.u32 %s1568_s19, 4  ;;  %s278_s20 = int_to_ptr.vmem [resolvable:$true] %s1680_s20 }
  0x14   : > { %s1376_s23 = scalar_lea.hbm %s2057_s3, 256 }
  0x15   : > { %p1377_p12 = scmp.ne.s32.totalorder %s2057_s3, %s1376_s23  ;;  %p1690_p13 = pneg %p1674_p11 }
  0x16   : > { %p1383_p5 = scmp.lt.u32.totalorder %s1376_s23, %s2057_s3 }
  0x17   : > { %p1379_p0 = pnand %p1690_p13, %p1377_p12 }
  0x19   : > { %p1380_p3 = pneg %p1379_p0 }
  0x1b   : > { %p1385_p7 = pnand %p1383_p5, %p1380_p3 }
  0x1d   : > { %1388 = shalt.err (!%p1385_p7)
}
  0x1e   : > { %s1389_s17 = scalar_lea.vmem %s1667_s15, 256  ;;  %p1397_p2 = scmp.lt.s32.totalorder %s1667_s15, %s1667_s15 }
  0x1f   : > { %p1390_p9 = scmp.ne.s32.totalorder %s1667_s15, %s1389_s17  ;;  %p1398_p6 = scmp.lt.s32.totalorder %s1389_s17, %s1389_s17 }
  0x21   : > { %p1392_p10 = pnand %p1390_p9, %p1690_p13  ;;  %p1399_p12 = por %p1398_p6, %p1397_p2 }
  0x23   : > { %p1393_p1 = pneg %p1392_p10 }
  0x25   : > { %p1400_p0 = pnand %p1399_p12, %p1393_p1 }
  0x27   : > { %1403 = shalt.err (!%p1400_p0)
}
  0x28   : > { %s1569_s19 = smov 64   ;;  %s1570_s21 = smov 4  }
  0x29   : > { %1277 = dma.hbm_to_vmem [thread:$0]  (!%p1674_p11), %s2057_s3, 256, %s1667_s15, [#allocation6], %s1569_s19, %s1569_s19, %s1570_s21  }
  0x2a   : > { %s1404_s10 = scalar_lea.hbm %s2058_s4, 256 }
  0x2b   : > { %p1405_p1 = scmp.ne.s32.totalorder %s2058_s4, %s1404_s10  ;;  %p1411_p10 = scmp.lt.u32.totalorder %s1404_s10, %s2058_s4 }
  0x2d   : > { %p1407_p2 = pnand %p1405_p1, %p1690_p13 }
  0x2f   : > { %p1408_p6 = pneg %p1407_p2 }
  0x31   : > { %p1413_p3 = pnand %p1411_p10, %p1408_p6 }
  0x33   : > { %1416 = shalt.err (!%p1413_p3)
}
  0x34   : > { %s1417_s15 = scalar_lea.vmem %s1678_s18, 256  ;;  %p1425_p12 = scmp.lt.s32.totalorder %s1678_s18, %s1678_s18 }
  0x35   : > { %p1418_p5 = scmp.ne.s32.totalorder %s1678_s18, %s1417_s15  ;;  %p1426_p0 = scmp.lt.s32.totalorder %s1417_s15, %s1417_s15 }
  0x37   : > { %p1420_p7 = pnand %p1418_p5, %p1690_p13  ;;  %p1427_p1 = por %p1426_p0, %p1425_p12 }
  0x39   : > { %p1421_p9 = pneg %p1420_p7 }
  0x3b   : > { %p1428_p2 = pnand %p1427_p1, %p1421_p9 }
  0x3d   : > { %1431 = shalt.err (!%p1428_p2)
}
  0x3e   : > { %1280 = dma.hbm_to_vmem [thread:$0]  (!%p1674_p11), %s2058_s4, 256, %s1678_s18, [#allocation6], %s1569_s19, %s1569_s19, %s1570_s21  }
  0x3f   : > { %s1432_s24 = scalar_lea.hbm %s2060_s6, 1024 }
  0x40   : > { %p1433_p6 = scmp.ne.s32.totalorder %s2060_s6, %s1432_s24  ;;  %p1439_p5 = scmp.lt.u32.totalorder %s1432_s24, %s2060_s6 }
  0x42   : > { %p1435_p10 = pnand %p1433_p6, %p1690_p13 }
  0x44   : > { %p1436_p3 = pneg %p1435_p10 }
  0x46   : > { %p1441_p7 = pnand %p1439_p5, %p1436_p3 }
  0x48   : > { %1444 = shalt.err (!%p1441_p7)
}
  0x49   : > { %s1445_s15 = scalar_lea.vmem %s278_s20, 1024  ;;  %p1453_p1 = scmp.lt.s32.totalorder %s278_s20, %s278_s20 }
  0x4a   : > { %p1446_p9 = scmp.ne.s32.totalorder %s278_s20, %s1445_s15  ;;  %p1454_p2 = scmp.lt.s32.totalorder %s1445_s15, %s1445_s15 }
  0x4c   : > { %p1448_p12 = pnand %p1446_p9, %p1690_p13  ;;  %p1455_p4 = por %p1454_p2, %p1453_p1 }
  0x4e   : > { %p1449_p0 = pneg %p1448_p12 }
  0x50   : > { %p1456_p8 = pnand %p1455_p4, %p1449_p0 }
  0x52   : > { %1459 = shalt.err (!%p1456_p8)
}
  0x53   : > { %1283 = dma.hbm_to_vmem [thread:$0]  (!%p1674_p11), %s2060_s6, 1024, %s278_s20, [#allocation9], %s1569_s19, %s1569_s19, %s1570_s21  }
  0x54   : > { %s1763_s26 = sadd.s32 1, %s1564_s30   ;;  %s33_s12 = sadd.s32 1, %s1560_s29 }
  0x55   : > { %s30_s16 = ssub.s32 %s1564_s30, %s1763_s26  ;;  %p40_p8 = scmp.ne.s32.totalorder %s1560_s29, %s1556_s28 }
  0x56   : > { %p31_p4 = scmp.eq.s32.totalorder %s30_s16, 0  ;;  %p41_p13 = scmp.eq.s32.totalorder %s1564_s30, 0 }
  0x57   : > { %p1295_p6 = scmp.lt.s32.totalorder %s1564_s30, 2  ;;  %p2075_p3 = scmp.eq.s32.totalorder %s1644_s9, 1 }
  0x58   : > { %s1773_s22 = scalar_select %p31_p4, %s1560_s29, %s33_s12  }
  0x59   : > { %p42_p10 = por %p41_p13, %p40_p8  ;;  %p1777_p5 = por %p2075_p3, %p40_p8 }
  0x5a   : > { %s294_s24 = sand.u32 1, %s1560_s29   ;;  %s1206_s25 = sshll.u32 %s1564_s30, 10 }
  0x5b   : > { %s1175_s20 = sshll.u32 %s294_s24, 6  ;;  %s1786_s10 = scalar_lea.hbm %s2054_s0, %s1206_s25 }
  0x5c   : > { %s298_s14 = scalar_lea.vmem [#allocation2], %s1175_s20  ;;  %p1788_p11 = pnand %p1295_p6, %p42_p10 }
  0x5d   : > { %s305_s17 = sshll.u32 %s298_s14, 4  ;;  %s1794_s18 = scalar_lea.sflag [#allocation3], %s294_s24  ;;  %s1792_s17 = int_to_ptr.vmem [resolvable:$true] %s305_s17 }
  0x5e   : > { %s1460_s27 = scalar_lea.hbm %s1786_s10, 1024  ;;  %p1462_p9 = pneg %p1788_p11 }
  0x5f   : > { %p1461_p7 = scmp.ne.s32.totalorder %s1786_s10, %s1460_s27  ;;  %s1465_s25 = scalar_lea.hbm %s2054_s0, 2048 }
  0x60   : > { %p1466_p1 = scmp.lt.u32.totalorder %s1786_s10, %s2054_s0  ;;  %p1467_p2 = scmp.lt.u32.totalorder %s1465_s25, %s1460_s27 }
  0x61   : > { %p1463_p12 = pnand %p1462_p9, %p1461_p7  ;;  %p1469_p8 = scmp.lt.u32.totalorder %s1460_s27, %s1786_s10 }
  0x62   : > { %p1468_p4 = por %p1467_p2, %p1466_p1 }
  0x63   : > { %p1464_p0 = pneg %p1463_p12 }
  0x64   : > { %p1470_p13 = por %p1469_p8, %p1468_p4 }
  0x66   : > { %p1471_p6 = pnand %p1470_p13, %p1464_p0 }
  0x68   : > { %1474 = shalt.err (!%p1471_p6)
}
  0x69   : > { %s1475_s24 = scalar_lea.vmem %s1792_s17, 1024  ;;  %s1571_s21 = smov [#allocation2]  }
  0x6a   : > { %p1476_p10 = scmp.ne.s32.totalorder %s1792_s17, %s1475_s24  ;;  %s1480_s14 = sshll.u32 %s1571_s21, 4  ;;  %s1481_s14 = int_to_ptr.vmem [resolvable:$false] %s1480_s14 }
  0x6b   : > { %s1482_s16 = scalar_lea.vmem %s1481_s14, 2048  ;;  %p1483_p12 = scmp.lt.s32.totalorder %s1792_s17, %s1481_s14 }
  0x6c   : > { %p1478_p3 = pnand %p1476_p10, %p1462_p9  ;;  %p1484_p1 = scmp.lt.s32.totalorder %s1482_s16, %s1475_s24 }
  0x6e   : > { %p1479_p7 = pneg %p1478_p3  ;;  %p1485_p2 = por %p1484_p1, %p1483_p12 }
  0x70   : > { %p1486_p4 = pnand %p1485_p2, %p1479_p7 }
  0x72   : > { %1489 = shalt.err (!%p1486_p4)
}
  0x73   : > { %s1572_s27 = smov 128   ;;  %s1573_s12 = smov 8  }
  0x74   : > { %1287 = dma.hbm_to_vmem [thread:$0]  (!%p1788_p11), %s1786_s10, 1024, %s1792_s17, %s1794_s18, %s1572_s27, %s1572_s27, %s1573_s12  }
  0x75   : > { %p2078_p9 = scmp.ne.s32.totalorder %s2072_s13, 0 }
  0x76   : > { %s1825_s25 = sand.u32 (!%p2078_p9), 1, %s1556_s28   ;;  %p2079_p0 = scmp.ne.s32.totalorder (!%p2078_p9), %s2069_s11, 0 }
  0x77   : > { %317 = sbr.rel (%p2078_p9) target bundleno = 1624 (0x658), region = 52  ;;  %s1179_s20 = sshll.u32 (!%p2078_p9), %s1825_s25, 6 }
  0x78   : > { %s320_s19 = scalar_lea.sflag (!%p2078_p9), [#allocation3], %s1825_s25  ;;  %s323_s24 = scalar_lea.vmem (!%p2078_p9), [#allocation2], %s1179_s20 }
  0x7e   : > { %1535 = dma.done.wait (%p2079_p0), %s320_s19, 1024  }
  0x7f   : > { %1537 = vsyncadd (%p2079_p0), %s320_s19, 4294966272  ;;  %p2080_p8 = scmp.eq.s32.totalorder %s1644_s9, 0 }
  0x81   : > { %1539 = dma.done.wait (%p2080_p8), [#allocation6], 512   ;;  %p2081_p11 = pmov %p2080_p8 }
  0x82   : > { %p2082_p13 = pmov %p2080_p8 }
  0x83   : > { %1541 = vsyncadd (%p2081_p11), [#allocation6], 4294966784 }
  0x84   : > { %1543 = dma.done.wait (%p2082_p13), [#allocation9], 1024   ;;  %p2083_p6 = pmov %p2080_p8 }
  0x85   : > { %v1841_v0 = vld [vmem:[%s323_s24] sm:$0xff]  ;;  %vm393_vm0 = vcmask 261120   ;;  %v1846_v2 = vld [vmem:[%s323_s24 + $0x10] sm:$0xff]  ;;  %v1850_v5 = vld [vmem:[%s323_s24 + $0x8] sm:$0xff]  ;;  %v426_v25 = vlaneseq  ;;  %vm460_vm1 = vcmask 1041409   ;;  %vm462_vm2 = vcmask 1042434  }
  0x86   : > { %1545 = vsyncadd (%p2083_p6), [#allocation9], 4294966272  ;;  %v1184_v1 = vld [vmem:[%s2055_s1] ss:$0 sm:$0xff]  ;;  %v1852_v6 = vld [vmem:[%s323_s24 + $0x18] sm:$0xff]  ;;  %vm464_vm3 = vcmask 1043459  }
  0x87   : > { %v385_v3 = vmul.f32 %v1184_v1, %v1841_v0  ;;  %v387_v4 = vmul.f32 %v1184_v1, %v1846_v2  ;;  %v1854_v7 = vld [vmem:[%s323_s24 + $0x20] sm:$0xff]  ;;  %v386_v8 = vmul.f32 %v1184_v1, %v1850_v5  ;;  %v388_v9 = vmul.f32 %v1184_v1, %v1852_v6  ;;  %v1859_v11 = vld [vmem:[%s323_s24 + $0x28] sm:$0xff]  ;;  %v1864_v15 = vld [vmem:[%s323_s24 + $0x30] sm:$0xff]  ;;  %s1183_s21 = sshll.u32 %s1825_s25, 3  ;;  %s1203_s27 = sshll.u32 %s1644_s9, 7 }
  0x88   : > { %v389_v10 = vmul.f32 %v1184_v1, %v1854_v7  ;;  %v390_v14 = vmul.f32 %v1184_v1, %v1859_v11  ;;  %v1866_v16 = vld [vmem:[%s323_s24 + $0x38] sm:$0xff]  ;;  %v391_v21 = vmul.f32 %v1184_v1, %v1864_v15  ;;  %v427_v26 = vand.u32 127, %v426_v25  ;;  %s367_s12 = scalar_lea.vmem [#allocation10], %s1183_s21  ;;  %s2010_s13 = scalar_lea.hbm %s2062_s8, %s1203_s27 }
  0x89   : > { %v394_v12 = vsel %vm393_vm0, %v385_v3, 0.0  ;;  %v400_v13 = vsel %vm393_vm0, %v387_v4, 0.0  ;;  %v397_v17 = vsel %vm393_vm0, %v386_v8, 0.0  ;;  %v403_v18 = vsel %vm393_vm0, %v388_v9, 0.0  ;;  %s1070_s20 = sshll.u32 %s367_s12, 4  ;;  %s1057_s10 = scalar_lea.sflag [#allocation4], %s1825_s25  ;;  %s2012_s20 = int_to_ptr.vmem [resolvable:$true] %s1070_s20 }
  0x8a   : > { %395 = vadd.xlane.f32.xlu0 %v394_v12  ;;  %401 = vadd.xlane.f32.xlu1 %v400_v13  ;;  %v406_v19 = vsel %vm393_vm0, %v389_v10, 0.0  ;;  %v409_v20 = vsel %vm393_vm0, %v390_v14, 0.0  ;;  %v392_v22 = vmul.f32 %v1184_v1, %v1866_v16  ;;  %v412_v23 = vsel %vm393_vm0, %v391_v21, 0.0  ;;  %s1490_s9 = scalar_lea.vmem %s2012_s20, 128  ;;  %s1577_s11 = smov [#allocation10]  }
  0x8b   : > { %v1876_v27 = vshrl.u32 %v426_v25, 7  ;;  %vm466_vm4 = vcmask 1044484   ;;  %vm468_vm5 = vcmask 1045509   ;;  %vm470_vm6 = vcmask 1046534   ;;  %p1491_p10 = scmp.ne.s32.totalorder %s2012_s20, %s1490_s9  ;;  %s1494_s17 = sshll.u32 %s1577_s11, 4  ;;  %s1495_s17 = int_to_ptr.vmem [resolvable:$false] %s1494_s17 }
  0x8c   : > { %v415_v24 = vsel %vm393_vm0, %v392_v22, 0.0  ;;  %vm472_vm7 = vcmask 1047559   ;;  %vm475_vm8 = vcmask 64512   ;;  %v1574_v53 = vmov 0   ;;  %s1496_s15 = scalar_lea.vmem %s1495_s17, 256  ;;  %p1497_p12 = scmp.lt.s32.totalorder %s2012_s20, %s1495_s17 }
  0x8d   : > { %v1879_v30 = vsub.s32 %v427_v26, %v1876_v27  ;;  %1343 = vset.pattern.permute.xlu0 %v1574_v53  ;;  %1342 = vset.pattern.permute.xlu1 %v1574_v53  ;;  %v482_v54 = vsub.s32 0, %v1876_v27  ;;  %v486_v55 = vsub.s32 1, %v1876_v27  ;;  %v490_v56 = vsub.s32 2, %v1876_v27  ;;  %p1492_p3 = pnand %p1491_p10, %p1777_p5  ;;  %p1498_p1 = scmp.lt.s32.totalorder %s1496_s15, %s1490_s9 }
  0x8e   : > { %398 = vadd.xlane.f32.xlu0 %v397_v17  ;;  %404 = vadd.xlane.f32.xlu1 %v403_v18  ;;  %v494_v57 = vsub.s32 3, %v1876_v27  ;;  %v498_v62 = vsub.s32 4, %v1876_v27  ;;  %v502_v10 = vsub.s32 5, %v1876_v27  ;;  %v506_v17 = vsub.s32 6, %v1876_v27 }
  0x8f   : > { %v510_v21 = vsub.s32 7, %v1876_v27  ;;  %vm1576_vm9 = vmmov 0   ;;  %p1493_p7 = pneg %p1492_p3  ;;  %p1499_p2 = por %p1498_p1, %p1497_p12 }
  0x91   : > { %p1500_p4 = pnand %p1499_p2, %p1493_p7 }
  0x92   : > { %407 = vadd.xlane.f32.xlu0 %v406_v19  ;;  %410 = vadd.xlane.f32.xlu1 %v409_v20 }
  0x96   : > { %413 = vadd.xlane.f32.xlu0 %v412_v23  ;;  %416 = vadd.xlane.f32.xlu1 %v415_v24 }
 0x117   : > { %v396_v28 = vpop.xlane.xlu0 %395  ;;  %v402_v29 = vpop.xlane.xlu1 %401 }
 0x118   : > { %v431_v33 = vrot.slane %v396_v28, %v1879_v30  ;;  %v439_v36 = vrot.slane %v402_v29, %v1879_v30 }
 0x11b   : > { %v399_v31 = vpop.xlane.xlu0 %398  ;;  %v405_v32 = vpop.xlane.xlu1 %404 }
 0x11c   : > { %v435_v34 = vrot.slane %v399_v31, %v1879_v30  ;;  %v443_v35 = vrot.slane %v405_v32, %v1879_v30 }
 0x11e   : > { %v461_v37 = vsel %vm460_vm1, %v435_v34, %v431_v33 }
 0x11f   : > { %v463_v38 = vsel %vm462_vm2, %v439_v36, %v461_v37  ;;  %v408_v39 = vpop.xlane.xlu0 %407  ;;  %v411_v40 = vpop.xlane.xlu1 %410 }
 0x120   : > { %v465_v41 = vsel %vm464_vm3, %v443_v35, %v463_v38  ;;  %v447_v42 = vrot.slane %v408_v39, %v1879_v30  ;;  %v451_v43 = vrot.slane %v411_v40, %v1879_v30 }
 0x122   : > { %v467_v44 = vsel %vm466_vm4, %v447_v42, %v465_v41 }
 0x123   : > { %v414_v45 = vpop.xlane.xlu0 %413  ;;  %v417_v46 = vpop.xlane.xlu1 %416  ;;  %v469_v49 = vsel %vm468_vm5, %v451_v43, %v467_v44 }
 0x124   : > { %v455_v47 = vrot.slane %v414_v45, %v1879_v30  ;;  %v459_v48 = vrot.slane %v417_v46, %v1879_v30 }
 0x126   : > { %v471_v50 = vsel %vm470_vm6, %v455_v47, %v469_v49 }
 0x127   : > { %v473_v51 = vsel %vm472_vm7, %v459_v48, %v471_v50 }
 0x128   : > { %v476_v52 = vsel %vm475_vm8, %v473_v51, -inf }
 0x129   : > { %477 = vmax.xlane.f32.xlu0 %v476_v52 }
 0x1b6   : > { %v478_v58 = vpop.xlane.xlu0 %477 }
 0x1b7   : > { %v483_v59 = vrot.slane %v478_v58, %v482_v54  ;;  %v487_v60 = vrot.slane %v478_v58, %v486_v55  ;;  %v491_v61 = vrot.slane %v478_v58, %v490_v56  ;;  %v495_v63 = vrot.slane %v478_v58, %v494_v57 }
 0x1b8   : > { %v499_v12 = vrot.slane %v478_v58, %v498_v62  ;;  %v503_v18 = vrot.slane %v478_v58, %v502_v10  ;;  %v507_v22 = vrot.slane %v478_v58, %v506_v17 }
 0x1b9   : > { %v520_v1 = vsub.f32 %v396_v28, %v483_v59  ;;  %v521_v3 = vsub.f32 %v399_v31, %v487_v60  ;;  %v522_v4 = vsub.f32 %v402_v29, %v491_v61  ;;  %v523_v13 = vsub.f32 %v405_v32, %v495_v63 }
 0x1ba   : > { %v524_v19 = vsub.f32 %v408_v39, %v499_v12  ;;  %v525_v23 = vsub.f32 %v411_v40, %v503_v18  ;;  %v511_v28 = vrot.slane %v478_v58, %v510_v21  ;;  %v526_v29 = vsub.f32 %v414_v45, %v507_v22 }
 0x1bb   : > { %v528_v8 = vmul.f32 1.442695, %v520_v1  ;;  %v530_v9 = vmul.f32 1.442695, %v521_v3  ;;  %v532_v14 = vmul.f32 1.442695, %v522_v4 }
 0x1bc   : > { %v534_v20 = vmul.f32 1.442695, %v523_v13  ;;  %v536_v24 = vmul.f32 1.442695, %v524_v19  ;;  %v538_v31 = vmul.f32 1.442695, %v525_v23  ;;  %v527_v33 = vsub.f32 %v417_v46, %v511_v28 }
 0x1bd   : > { %1356 = vpow2.f32 %v528_v8  ;;  %v540_v34 = vmul.f32 1.442695, %v526_v29 }
 0x1be   : > { %1358 = vpow2.f32 %v530_v9  ;;  %v542_v36 = vmul.f32 1.442695, %v527_v33 }
 0x1bf   : > { %1360 = vpow2.f32 %v532_v14 }
 0x1c0   : > { %1362 = vpow2.f32 %v534_v20 }
 0x1c1   : > { %1364 = vpow2.f32 %v536_v24 }
 0x1c2   : > { %1366 = vpow2.f32 %v538_v31 }
 0x1c3   : > { %1368 = vpow2.f32 %v540_v34 }
 0x1c4   : > { %1370 = vpow2.f32 %v542_v36 }
 0x1c7   : > { %v1357_v25 = vpop.eup %1356 }
 0x1c8   : > { %v1359_v26 = vpop.eup %1358  ;;  %553 = vperm.xlu1 %1342, %v1357_v25  }
 0x1c9   : > { %556 = vperm.xlu0 %1343, %v1359_v26   ;;  %v1361_v32 = vpop.eup %1360 }
 0x1ca   : > { %v1363_v35 = vpop.eup %1362 }
 0x1cb   : > { %v1365_v37 = vpop.eup %1364 }
 0x1cc   : > { %559 = vperm.xlu1 %1342, %v1361_v32   ;;  %v1367_v38 = vpop.eup %1366 }
 0x1cd   : > { %v1369_v39 = vpop.eup %1368 }
 0x1ce   : > { %v1371_v40 = vpop.eup %1370 }
 0x1d0   : > { %562 = vperm.xlu1 %1342, %v1363_v35  }
 0x1d4   : > { %565 = vperm.xlu1 %1342, %v1365_v37  }
 0x1d8   : > { %568 = vperm.xlu1 %1342, %v1367_v38  }
 0x1dc   : > { %571 = vperm.xlu1 %1342, %v1369_v39  }
 0x1e0   : > { %574 = vperm.xlu1 %1342, %v1371_v40  }
 0x247   : > { %v554_v41 = vpop.permute.xlu1 %553 }
 0x248   : > { %v557_v45 = vpop.permute.xlu0 %556  ;;  %v579_v48 = vrot.slane %v554_v41, %v1879_v30 }
 0x249   : > { %v583_v47 = vrot.slane %v557_v45, %v1879_v30 }
 0x24b   : > { %v560_v42 = vpop.permute.xlu1 %559  ;;  %v608_v53 = vsel %vm460_vm1, %v583_v47, %v579_v48 }
 0x24c   : > { %v587_v49 = vrot.slane %v560_v42, %v1879_v30 }
 0x24e   : > { %v609_v59 = vsel %vm462_vm2, %v587_v49, %v608_v53 }
 0x24f   : > { %v563_v43 = vpop.permute.xlu1 %562 }
 0x250   : > { %v591_v50 = vrot.slane %v563_v43, %v1879_v30 }
 0x252   : > { %v610_v61 = vsel %vm464_vm3, %v591_v50, %v609_v59 }
 0x253   : > { %v566_v44 = vpop.permute.xlu1 %565 }
 0x254   : > { %v595_v51 = vrot.slane %v566_v44, %v1879_v30 }
 0x256   : > { %v611_v63 = vsel %vm466_vm4, %v595_v51, %v610_v61 }
 0x257   : > { %v569_v46 = vpop.permute.xlu1 %568 }
 0x258   : > { %v599_v58 = vrot.slane %v569_v46, %v1879_v30 }
 0x25a   : > { %v612_v3 = vsel %vm468_vm5, %v599_v58, %v611_v63 }
 0x25b   : > { %v572_v52 = vpop.permute.xlu1 %571 }
 0x25c   : > { %v603_v60 = vrot.slane %v572_v52, %v1879_v30 }
 0x25e   : > { %v613_v8 = vsel %vm470_vm6, %v603_v60, %v612_v3 }
 0x25f   : > { %v575_v1 = vpop.permute.xlu1 %574 }
 0x260   : > { %v607_v4 = vrot.slane %v575_v1, %v1879_v30 }
 0x262   : > { %v614_v9 = vsel %vm472_vm7, %v607_v4, %v613_v8 }
 0x263   : > { %v616_v12 = vsel %vm475_vm8, %v614_v9, 0.0 }
 0x264   : > { %617 = vadd.xlane.f32.xlu1 %v616_v12 }
 0x2f1   : > { %v618_v13 = vpop.xlane.xlu1 %617 }
 0x2f2   : > { %1372 = vrcp.f32 %v618_v13 }
 0x2fc   : > { %v1373_v14 = vpop.eup %1372 }
 0x2fd   : > { %v624_v18 = vrot.slane %v1373_v14, %v482_v54  ;;  %v628_v20 = vrot.slane %v1373_v14, %v486_v55  ;;  %v632_v30 = vrot.slane %v1373_v14, %v490_v56  ;;  %v636_v24 = vrot.slane %v1373_v14, %v494_v57 }
 0x2fe   : > { %v640_v29 = vrot.slane %v1373_v14, %v498_v62  ;;  %v644_v55 = vrot.slane %v1373_v14, %v502_v10  ;;  %v648_v56 = vrot.slane %v1373_v14, %v506_v17  ;;  %v652_v57 = vrot.slane %v1373_v14, %v510_v21  ;;  %v1345_v10 = vld [vmem:[#allocation5 + $0x8] sm:$0xff]  }
 0x2ff   : > { %v661_v19 = vmul.f32 %v1357_v25, %v624_v18  ;;  %v662_v22 = vmul.f32 %v1359_v26, %v628_v20  ;;  %v663_v23 = vmul.f32 %v1361_v32, %v632_v30  ;;  %v664_v28 = vmul.f32 %v1363_v35, %v636_v24  ;;  %v1344_v32 = vld [vmem:[#allocation5] sm:$0xff]  }
 0x300   : > { %v665_v54 = vmul.f32 %v1365_v37, %v640_v29  ;;  %v666_v25 = vmul.f32 %v1367_v38, %v644_v55  ;;  %v667_v26 = vmul.f32 %v1369_v39, %v648_v56  ;;  %v668_v31 = vmul.f32 %v1371_v40, %v652_v57 }
 0x301   : > { %671 = vperm.xlu0 %1343, %v661_v19   ;;  %v1575_v62 = vmov 0.0  }
 0x302   : > { %1222 = vmatprep.subr.bf16.mxu1 %v1575_v62  ;;  %1226 = vmatprep.mubr.msk.bf16.mxu1 %vm1576_vm9, %v1575_v62 }
 0x303   : > { %1223 = vmatpush3.bf16.msra.mxu1 %v1344_v32  ;;  %1238 = vmatprep.subr.bf16.mxu0 %v1575_v62 }
 0x304   : > { %1224 = vmatprep.subr.bf16.mxu1 %v1575_v62  ;;  %1254 = vmatprep.mubr.msk.bf16.mxu0 %vm1576_vm9, %v1575_v62 }
 0x305   : > { %676 = vperm.xlu0 %1343, %v662_v22  }
 0x307   : > { %1225 = vmatpush3.bf16.msra.mxu1 %v1345_v10 }
 0x308   : > { %1230 = vmatprep.subr.bf16.mxu1 %v1575_v62 }
 0x309   : > { %681 = vperm.xlu0 %1343, %v663_v23  }
 0x30d   : > { %686 = vperm.xlu0 %1343, %v664_v28  }
 0x311   : > { %691 = vperm.xlu0 %1343, %v665_v54  }
 0x315   : > { %696 = vperm.xlu0 %1343, %v666_v25  }
 0x319   : > { %701 = vperm.xlu0 %1343, %v667_v26  }
 0x31d   : > { %706 = vperm.xlu0 %1343, %v668_v31  }
 0x380   : > { %v672_v27 = vpop.permute.xlu0 %671 }
 0x381   : > { %v709_v21 = vmul.f32 %v672_v27, %v1841_v0 }
 0x383   : > { %v717_v36 = vsel %vm393_vm0, %v709_v21, 0.0 }
 0x384   : > { %v677_v17 = vpop.permute.xlu0 %676  ;;  %v718_v40 = vrot.slane %v717_v36, 4 }
 0x385   : > { %v710_v33 = vmul.f32 %v677_v17, %v1850_v5 }
 0x386   : > { %v719_v5 = vadd.f32 %v718_v40, %v717_v36 }
 0x387   : > { %v724_v34 = vsel %vm393_vm0, %v710_v33, 0.0 }
 0x388   : > { %v682_v35 = vpop.permute.xlu0 %681  ;;  %v725_v38 = vrot.slane %v724_v34, 4  ;;  %v720_v52 = vrot.slane %v719_v5, 2 }
 0x389   : > { %v711_v37 = vmul.f32 %v682_v35, %v1846_v2 }
 0x38a   : > { %v726_v44 = vadd.f32 %v725_v38, %v724_v34  ;;  %v721_v3 = vadd.f32 %v720_v52, %v719_v5 }
 0x38b   : > { %v731_v39 = vsel %vm393_vm0, %v711_v37, 0.0 }
 0x38c   : > { %v732_v41 = vrot.slane %v731_v39, 4  ;;  %v687_v42 = vpop.permute.xlu0 %686  ;;  %v727_v49 = vrot.slane %v726_v44, 2  ;;  %v722_v22 = vrot.slane %v721_v3, 1 }
 0x38d   : > { %v712_v43 = vmul.f32 %v687_v42, %v1852_v6 }
 0x38e   : > { %v733_v45 = vadd.f32 %v732_v41, %v731_v39  ;;  %v728_v60 = vadd.f32 %v727_v49, %v726_v44  ;;  %v723_v26 = vadd.f32 %v722_v22, %v721_v3  ;;  %v1347_v3 = vld [vmem:[#allocation7 + $0x8] sm:$0xff]  }
 0x38f   : > { %v738_v0 = vsel %vm393_vm0, %v712_v43, 0.0  ;;  %v1351_v22 = vld [vmem:[#allocation8 + $0x18] sm:$0xff]  }
 0x390   : > { %v739_v46 = vrot.slane %v738_v0, 4  ;;  %v692_v47 = vpop.permute.xlu0 %691  ;;  %v734_v2 = vrot.slane %v733_v45, 2  ;;  %v729_v13 = vrot.slane %v728_v60, 1  ;;  %v773_v36 = vpack.c.bf16 %v723_v26, %v723_v26 }
 0x391   : > { %v713_v48 = vmul.f32 %v692_v47, %v1854_v7 }
 0x392   : > { %v740_v50 = vadd.f32 %v739_v46, %v738_v0  ;;  %v735_v63 = vadd.f32 %v734_v2, %v733_v45  ;;  %v730_v54 = vadd.f32 %v729_v13, %v728_v60  ;;  %v800_v45 = vunpack.c.l.b16 %v773_v36 }
 0x393   : > { %v745_v51 = vsel %vm393_vm0, %v713_v48, 0.0 }
 0x394   : > { %v741_v53 = vrot.slane %v740_v50, 2  ;;  %v746_v58 = vrot.slane %v745_v51, 4  ;;  %v697_v59 = vpop.permute.xlu0 %696  ;;  %v736_v18 = vrot.slane %v735_v63, 1  ;;  %v774_v17 = vpack.c.bf16 %v730_v54, %v730_v54 }
 0x395   : > { %v714_v6 = vmul.f32 %v697_v59, %v1859_v11 }
 0x396   : > { %v747_v61 = vadd.f32 %v746_v58, %v745_v51  ;;  %v742_v4 = vadd.f32 %v741_v53, %v740_v50  ;;  %v737_v25 = vadd.f32 %v736_v18, %v735_v63  ;;  %v801_v40 = vunpack.c.l.b16 %v774_v17  ;;  %v1346_v63 = vld [vmem:[#allocation7] sm:$0xff]  }
 0x397   : > { %v752_v1 = vsel %vm393_vm0, %v714_v6, 0.0 }
 0x398   : > { %v748_v8 = vrot.slane %v747_v61, 2  ;;  %v702_v7 = vpop.permute.xlu0 %701  ;;  %v753_v9 = vrot.slane %v752_v1, 4  ;;  %v743_v11 = vrot.slane %v742_v4, 1  ;;  %v775_v34 = vpack.c.bf16 %v737_v25, %v737_v25 }
 0x399   : > { %v715_v12 = vmul.f32 %v702_v7, %v1864_v15  ;;  %v808_v48 = vsel %vm460_vm1, %v801_v40, %v800_v45  ;;  %v1350_v7 = vld [vmem:[#allocation8 + $0x10] sm:$0xff]  }
 0x39a   : > { %v749_v14 = vadd.f32 %v748_v8, %v747_v61  ;;  %v754_v19 = vadd.f32 %v753_v9, %v752_v1  ;;  %v744_v57 = vadd.f32 %v743_v11, %v742_v4  ;;  %v802_v44 = vunpack.c.l.b16 %v775_v34  ;;  %v1348_v4 = vld [vmem:[#allocation8] sm:$0xff]   ;;  %v1349_v8 = vld [vmem:[#allocation8 + $0x8] sm:$0xff]  }
 0x39b   : > { %v759_v20 = vsel %vm393_vm0, %v715_v12, 0.0  ;;  %1239 = vmatpush3.bf16.msra.mxu0 %v1348_v4  ;;  %v1185_v9 = vld [vmem:[%s2056_s2] ss:$0 sm:$0xff] }
 0x39c   : > { %v760_v30 = vrot.slane %v759_v20, 4  ;;  %v707_v23 = vpop.permute.xlu0 %706  ;;  %v750_v24 = vrot.slane %v749_v14, 1  ;;  %v755_v28 = vrot.slane %v754_v19, 2  ;;  %v776_v37 = vpack.c.bf16 %v744_v57, %v744_v57  ;;  %1240 = vmatprep.subr.bf16.mxu0 %v1575_v62  ;;  %v1352_v11 = vld [vmem:[#allocation8 + $0x20] sm:$0xff]  }
 0x39d   : > { %v716_v29 = vmul.f32 %v707_v23, %v1866_v16  ;;  %v809_v2 = vsel %vm462_vm2, %v802_v44, %v808_v48  ;;  %v1354_v23 = vld [vmem:[#allocation8 + $0x30] sm:$0xff]  }
 0x39e   : > { %v761_v55 = vadd.f32 %v760_v30, %v759_v20  ;;  %v756_v56 = vadd.f32 %v755_v28, %v754_v19  ;;  %v751_v10 = vadd.f32 %v750_v24, %v749_v14  ;;  %v803_v0 = vunpack.c.l.b16 %v776_v37  ;;  %v1353_v30 = vld [vmem:[#allocation8 + $0x28] sm:$0xff]   ;;  %v1355_v24 = vld [vmem:[#allocation8 + $0x38] sm:$0xff]   ;;  %v1189_v28 = vld [vmem:[%s2059_s5] ss:$0 sm:$0xff] }
 0x39f   : > { %v766_v15 = vsel %vm393_vm0, %v716_v29, 0.0  ;;  %1241 = vmatpush3.bf16.msra.mxu0 %v1349_v8 }
 0x3a0   : > { %v762_v31 = vrot.slane %v761_v55, 2  ;;  %v767_v32 = vrot.slane %v766_v15, 4  ;;  %v757_v27 = vrot.slane %v756_v56, 1  ;;  %v777_v39 = vpack.c.bf16 %v751_v10, %v751_v10  ;;  %1242 = vmatprep.subr.bf16.mxu0 %v1575_v62  ;;  %v1193_v10 = vld [vmem:[%s2061_s7] ss:$0 sm:$0xff] }
 0x3a1   : > { %v810_v52 = vsel %vm464_vm3, %v803_v0, %v809_v2 }
 0x3a2   : > { %v763_v21 = vadd.f32 %v762_v31, %v761_v55  ;;  %v768_v33 = vadd.f32 %v767_v32, %v766_v15  ;;  %v758_v35 = vadd.f32 %v757_v27, %v756_v56  ;;  %v804_v47 = vunpack.c.l.b16 %v777_v39 }
 0x3a3   : > { %1243 = vmatpush3.bf16.msra.mxu0 %v1350_v7 }
 0x3a4   : > { %v764_v16 = vrot.slane %v763_v21, 1  ;;  %v769_v38 = vrot.slane %v768_v33, 2  ;;  %v778_v41 = vpack.c.bf16 %v758_v35, %v758_v35  ;;  %v811_v58 = vsel %vm466_vm4, %v804_v47, %v810_v52  ;;  %1244 = vmatprep.subr.bf16.mxu0 %v1575_v62 }
 0x3a6   : > { %v765_v42 = vadd.f32 %v764_v16, %v763_v21  ;;  %v770_v43 = vadd.f32 %v769_v38, %v768_v33  ;;  %v805_v49 = vunpack.c.l.b16 %v778_v41 }
 0x3a7   : > { %1245 = vmatpush3.bf16.msra.mxu0 %v1351_v22 }
 0x3a8   : > { %v779_v5 = vpack.c.bf16 %v765_v42, %v765_v42  ;;  %v771_v46 = vrot.slane %v770_v43, 1  ;;  %v812_v6 = vsel %vm468_vm5, %v805_v49, %v811_v58  ;;  %1246 = vmatprep.subr.bf16.mxu0 %v1575_v62 }
 0x3aa   : > { %v772_v50 = vadd.f32 %v771_v46, %v770_v43  ;;  %v806_v51 = vunpack.c.l.b16 %v779_v5 }
 0x3ab   : > { %1247 = vmatpush3.bf16.msra.mxu0 %v1352_v11 }
 0x3ac   : > { %v780_v53 = vpack.c.bf16 %v772_v50, %v772_v50  ;;  %v813_v60 = vsel %vm470_vm6, %v806_v51, %v812_v6  ;;  %1248 = vmatprep.subr.bf16.mxu0 %v1575_v62 }
 0x3ae   : > { %v807_v59 = vunpack.c.l.b16 %v780_v53 }
 0x3af   : > { %1249 = vmatpush3.bf16.msra.mxu0 %v1353_v30 }
 0x3b0   : > { %v814_v61 = vsel %vm472_vm7, %v807_v59, %v813_v60  ;;  %1250 = vmatprep.subr.bf16.mxu0 %v1575_v62 }
 0x3b1   : > { %v815_v1 = vpack.c.b16 %v814_v61, %v814_v61 }
 0x3b3   : > { %1227 = vmatmul.mubr.msk.bf16.vlgmr.msra.gmra.mrb[0].mxu1 %vm393_vm0, %v815_v1  ;;  %1251 = vmatpush3.bf16.msra.mxu0 %v1354_v23 }
 0x3b4   : > { %1231 = vmatpush3.bf16.msra.mxu1 %v1346_v63  ;;  %1234 = vmatprep.mubr.msk.bf16.mxu1 %vm1576_vm9, %v1575_v62 }
 0x3b5   : > { %1232 = vmatprep.subr.bf16.mxu1 %v1575_v62  ;;  %1252 = vmatprep.subr.bf16.mxu0 %v1575_v62 }
 0x3b7   : > { %1253 = vmatpush3.bf16.msra.mxu0 %v1355_v24 }
 0x3b8   : > { %1233 = vmatpush3.bf16.msra.mxu1 %v1347_v3 }
 0x486   : > { %v865_v12 = vpop.f32.mrb[0].mxu1 }
 0x487   : > { %v866_v13 = vadd.f32 %v1185_v9, %v865_v12  ;;  %v1228_v14 = vpop.f32.mrb[1].mxu1 }
 0x488   : > { %v868_v18 = vpop.f32.mrb[2].mxu1 }
 0x489   : > { %v871_v19 = vpack.c.bf16 %v866_v13, %v866_v13  ;;  %v1229_v20 = vpop.f32.mrb[3].mxu1 }
 0x48b   : > { %1235 = vmatmul.mubr.msk.bf16.vlgmr.msra.gmra.mrb[4].mxu1 %vm393_vm0, %v871_v19 }
 0x55e   : > { %v932_v29 = vpop.f32.mrb[4].mxu1 }
 0x55f   : > { %v933_v54 = vadd.f32 %v1189_v28, %v932_v29  ;;  %v1236_v55 = vpop.f32.mrb[5].mxu1 }
 0x560   : > { %v935_v25 = vpop.f32.mrb[6].mxu1 }
 0x561   : > { %v939_v56 = vmul.f32 0.70710677, %v933_v54  ;;  %v1237_v15 = vpop.f32.mrb[7].mxu1  ;;  %v938_v57 = vmul.f32 0.5, %v933_v54 }
 0x563   : > { %1374 = verf.f32 %v939_v56 }
 0x56d   : > { %v1375_v26 = vpop.eup %1374 }
 0x56e   : > { %v941_v31 = vadd.f32 1.0, %v1375_v26 }
 0x570   : > { %v942_v32 = vmul.f32 %v941_v31, %v938_v57 }
 0x572   : > { %v943_v62 = vpack.c.bf16 %v942_v32, %v942_v32 }
 0x574   : > { %1255 = vmatmul.mubr.bf16.vlgmr.msra.gmra.mrb[0].mxu0 %v943_v62 }
 0x647   : > { %v1049_v27 = vpop.f32.mrb[0].mxu0 }
 0x648   : > { %v1050_v17 = vadd.f32 %v1193_v10, %v1049_v27  ;;  %v1256_v21 = vpop.f32.mrb[1].mxu0 }
 0x649   : > { %v1052_v33 = vpop.f32.mrb[2].mxu0 }
 0x64a   : > { %1055 = vst [vmem:[%s367_s12] sm:$0xff] %v1050_v17  ;;  %v1257_v34 = vpop.f32.mrb[3].mxu0 }
 0x64b   : > { %1503 = shalt.err (!%p1500_p4)
}
 0x64c   : > { %s1504_s25 = scalar_lea.hbm %s2010_s13, 128  ;;  %s1508_s14 = scalar_lea.hbm %s2062_s8, 256 }
 0x64d   : > { %p1505_p9 = scmp.ne.s32.totalorder %s2010_s13, %s1504_s25  ;;  %p1509_p11 = scmp.lt.u32.totalorder %s2010_s13, %s2062_s8 }
 0x64e   : > { %p1510_p13 = scmp.lt.u32.totalorder %s1508_s14, %s1504_s25  ;;  %p1512_p10 = scmp.lt.u32.totalorder %s1504_s25, %s2010_s13 }
 0x64f   : > { %p1506_p0 = pnand %p1505_p9, %p1777_p5 }
 0x650   : > { %p1511_p6 = por %p1510_p13, %p1509_p11 }
 0x651   : > { %p1507_p8 = pneg %p1506_p0 }
 0x652   : > { %p1513_p3 = por %p1512_p10, %p1511_p6 }
 0x654   : > { %p1514_p7 = pnand %p1513_p3, %p1507_p8 }
 0x656   : > { %1517 = shalt.err (!%p1514_p7)
}
 0x657   : > { %1272 = dma.vmem_to_hbm [thread:$0]  (%p1777_p5), %s2012_s20, 128, %s2010_s13, %s1057_s10  }
 0x658 PF: > { %s2084_s12 = sld [smem:[#allocation15_spill]]  ;;  %s2085_s19 = sld [smem:[#allocation16_spill]] }
 0x659   : > { %p2087_p1 = scmp.ge.s32.totalorder %s1564_s30, 2 }
 0x65e   : > { %s1082_s24 = sand.u32 1, %s2084_s12   ;;  %p2086_p12 = scmp.ne.s32.totalorder %s2085_s19, 0 }
 0x65f   : > { %s1083_s9 = scalar_lea.sflag [#allocation4], %s1082_s24 }
 0x660   : > { %p1289_p2 = pnand %p2087_p1, %p2086_p12 }
 0x662   : > { %1547 = dma.done.wait (!%p1289_p2), %s1083_s9, 128  }
 0x663   : > { %1549 = vsyncadd (!%p1289_p2), %s1083_s9, 4294967168  ;;  %p23_p4 = scmp.ge.s32.totalorder %s1763_s26, 4   ;;  %s2088_s27 = smov %s1556_s28 }
 0x664   : > { %s2089_s28 = smov %s1560_s29  ;;  %s2090_s29 = smov %s1773_s22 }
 0x665   : > { %s2091_s30 = smov %s1763_s26  ;;  %25 = sbr.rel (!%p23_p4) target bundleno = 7 (0x7), region = 109 }
 0x66c   :  { %1088 = vsyncpa [#allocation3], 1 }
 0x66d   :  { %1090 = vsyncpa [#allocation3 + $0x1], 1 }
 0x66e   :  { %1091 = vsyncpa [#allocation6], 1 }
 0x66f   :  { %1092 = vsyncpa [#allocation9], 1 }
 0x670   :  { %1093 = vsyncpa [#allocation4], 1 }
 0x671   :  { %1095 = vsyncpa [#allocation4 + $0x1], 1 }

// kernel: tpu_custom_call.1
= control target key start
LH: loop header
LB: loop body
LE: loop exit
PB: predicated region body
PF: predicated region fallthrough
CT: control target
= control target key end

     0   :  { %13 = vsyncpa [#allocation3], 0  ;;  %s2054_s0 = inlined_call_operand.hbm [shape: f32[16,8,32], index: 0, kind: input, shape index: {}]   ;;  %s2055_s1 = inlined_call_operand.vmem [shape: f32[1,32], index: 1, kind: input, shape index: {}]   ;;  %s2056_s2 = inlined_call_operand.vmem [shape: f32[1,32], index: 2, kind: input, shape index: {}]   ;;  %s2057_s3 = inlined_call_operand.hbm [shape: bf16[32,32], index: 3, kind: input, shape index: {}]   ;;  %s2058_s4 = inlined_call_operand.hbm [shape: bf16[32,128], index: 4, kind: input, shape index: {}]   ;;  %s2059_s5 = inlined_call_operand.vmem [shape: f32[1,128], index: 5, kind: input, shape index: {}]   ;;  %s2060_s6 = inlined_call_operand.hbm [shape: bf16[128,128], index: 6, kind: input, shape index: {}]   ;;  %s2061_s7 = inlined_call_operand.vmem [shape: f32[1,128], index: 7, kind: input, shape index: {}]   ;;  %s2062_s8 = inlined_call_operand.hbm [shape: f32[16,128], index: 8, kind: output, shape index: {}]  }
   0x1   :  { %15 = vsyncpa [#allocation3 + $0x1], 0 }
   0x2   :  { %16 = vsyncpa [#allocation6], 0 }
   0x3   :  { %17 = vsyncpa [#allocation9], 0 }
   0x4   :  { %18 = vsyncpa [#allocation4], 0 }
   0x5   :  { %20 = vsyncpa [#allocation4 + $0x1], 0  ;;  %s1623_s27 = smov 0   ;;  %s1625_s28 = smov 0  }
   0x6   :  { %s1627_s29 = smov 0   ;;  %s1629_s30 = smov 0  }
   0x7 LB: > { %2068 = sst [smem:[#allocation15_spill]] %s1552_s27  ;;  %s1644_s9 = sadd.s32 4294967295, %s1564_s30   ;;  %s1564_s30 = sphi %s1629_s30, %s2091_s30   ;;  %s1560_s29 = sphi %s1627_s29, %s2090_s29   ;;  %s1556_s28 = sphi %s1625_s28, %s2089_s28   ;;  %s1552_s27 = sphi %s1623_s27, %s2088_s27  }
   0x8   : > { %s1169_s10 = sadd.s32 4294967294, %s1564_s30   ;;  %p46_p0 = scmp.ne.s32.totalorder %s1556_s28, %s1552_s27 }
   0x9   : > { %p2063_p1 = scmp.eq.s32.totalorder %s1644_s9, 0  ;;  %p223_p3 = scmp.eq.s32.totalorder %s1169_s10, 1 }
   0xa   : > { %p1170_p5 = scmp.ge.s32.totalorder %s1564_s30, 1  ;;  %p230_p7 = scmp.lt.s32.totalorder %s1564_s30, 3 }
   0xb   : > { %p1653_p4 = por %p2063_p1, %p46_p0  ;;  %p1658_p6 = por %p223_p3, %p46_p0 }
   0xc   : > { %p1663_p8 = pnand %p1170_p5, %p230_p7  ;;  %s1566_s14 = smov [#allocation5]  }
   0xd   : > { %s2069_s11 = scalar_select %p1653_p4, 1, 0 }
   0xe   : > { %s2070_s12 = scalar_select %p1658_p6, 1, 0 }
   0xf   : > { %s2072_s13 = scalar_select %p1663_p8, 1, 0 }
  0x10   : > { %2071 = sst [smem:[#allocation16_spill]] %s2070_s12  ;;  %s248_s15 = sshll.u32 %s1566_s14, 4  ;;  %s1667_s15 = int_to_ptr.vmem [resolvable:$true] %s248_s15 }
  0x11   : > { %p1274_p9 = pneg %p1663_p8  ;;  %s1567_s17 = smov [#allocation7]  }
  0x12   : > { %s261_s18 = sshll.u32 %s1567_s17, 4  ;;  %s1568_s19 = smov [#allocation8]   ;;  %s1678_s18 = int_to_ptr.vmem [resolvable:$true] %s261_s18 }
  0x13   : > { %p1674_p11 = pnand %p1274_p9, %p2063_p1  ;;  %s1680_s20 = sshll.u32 %s1568_s19, 4  ;;  %s278_s20 = int_to_ptr.vmem [resolvable:$true] %s1680_s20 }
  0x14   : > { %s1376_s23 = scalar_lea.hbm %s2057_s3, 256 }
  0x15   : > { %p1377_p12 = scmp.ne.s32.totalorder %s2057_s3, %s1376_s23  ;;  %p1690_p13 = pneg %p1674_p11 }
  0x16   : > { %p1383_p5 = scmp.lt.u32.totalorder %s1376_s23, %s2057_s3 }
  0x17   : > { %p1379_p0 = pnand %p1690_p13, %p1377_p12 }
  0x19   : > { %p1380_p3 = pneg %p1379_p0 }
  0x1b   : > { %p1385_p7 = pnand %p1383_p5, %p1380_p3 }
  0x1d   : > { %1388 = shalt.err (!%p1385_p7)
}
  0x1e   : > { %s1389_s17 = scalar_lea.vmem %s1667_s15, 256  ;;  %p1397_p2 = scmp.lt.s32.totalorder %s1667_s15, %s1667_s15 }
  0x1f   : > { %p1390_p9 = scmp.ne.s32.totalorder %s1667_s15, %s1389_s17  ;;  %p1398_p6 = scmp.lt.s32.totalorder %s1389_s17, %s1389_s17 }
  0x21   : > { %p1392_p10 = pnand %p1390_p9, %p1690_p13  ;;  %p1399_p12 = por %p1398_p6, %p1397_p2 }
  0x23   : > { %p1393_p1 = pneg %p1392_p10 }
  0x25   : > { %p1400_p0 = pnand %p1399_p12, %p1393_p1 }
  0x27   : > { %1403 = shalt.err (!%p1400_p0)
}
  0x28   : > { %s1569_s19 = smov 64   ;;  %s1570_s21 = smov 4  }
  0x29   : > { %1277 = dma.hbm_to_vmem [thread:$0]  (!%p1674_p11), %s2057_s3, 256, %s1667_s15, [#allocation6], %s1569_s19, %s1569_s19, %s1570_s21  }
  0x2a   : > { %s1404_s10 = scalar_lea.hbm %s2058_s4, 256 }
  0x2b   : > { %p1405_p1 = scmp.ne.s32.totalorder %s2058_s4, %s1404_s10  ;;  %p1411_p10 = scmp.lt.u32.totalorder %s1404_s10, %s2058_s4 }
  0x2d   : > { %p1407_p2 = pnand %p1405_p1, %p1690_p13 }
  0x2f   : > { %p1408_p6 = pneg %p1407_p2 }
  0x31   : > { %p1413_p3 = pnand %p1411_p10, %p1408_p6 }
  0x33   : > { %1416 = shalt.err (!%p1413_p3)
}
  0x34   : > { %s1417_s15 = scalar_lea.vmem %s1678_s18, 256  ;;  %p1425_p12 = scmp.lt.s32.totalorder %s1678_s18, %s1678_s18 }
  0x35   : > { %p1418_p5 = scmp.ne.s32.totalorder %s1678_s18, %s1417_s15  ;;  %p1426_p0 = scmp.lt.s32.totalorder %s1417_s15, %s1417_s15 }
  0x37   : > { %p1420_p7 = pnand %p1418_p5, %p1690_p13  ;;  %p1427_p1 = por %p1426_p0, %p1425_p12 }
  0x39   : > { %p1421_p9 = pneg %p1420_p7 }
  0x3b   : > { %p1428_p2 = pnand %p1427_p1, %p1421_p9 }
  0x3d   : > { %1431 = shalt.err (!%p1428_p2)
}
  0x3e   : > { %1280 = dma.hbm_to_vmem [thread:$0]  (!%p1674_p11), %s2058_s4, 256, %s1678_s18, [#allocation6], %s1569_s19, %s1569_s19, %s1570_s21  }
  0x3f   : > { %s1432_s24 = scalar_lea.hbm %s2060_s6, 1024 }
  0x40   : > { %p1433_p6 = scmp.ne.s32.totalorder %s2060_s6, %s1432_s24  ;;  %p1439_p5 = scmp.lt.u32.totalorder %s1432_s24, %s2060_s6 }
  0x42   : > { %p1435_p10 = pnand %p1433_p6, %p1690_p13 }
  0x44   : > { %p1436_p3 = pneg %p1435_p10 }
  0x46   : > { %p1441_p7 = pnand %p1439_p5, %p1436_p3 }
  0x48   : > { %1444 = shalt.err (!%p1441_p7)
}
  0x49   : > { %s1445_s15 = scalar_lea.vmem %s278_s20, 1024  ;;  %p1453_p1 = scmp.lt.s32.totalorder %s278_s20, %s278_s20 }
  0x4a   : > { %p1446_p9 = scmp.ne.s32.totalorder %s278_s20, %s1445_s15  ;;  %p1454_p2 = scmp.lt.s32.totalorder %s1445_s15, %s1445_s15 }
  0x4c   : > { %p1448_p12 = pnand %p1446_p9, %p1690_p13  ;;  %p1455_p4 = por %p1454_p2, %p1453_p1 }
  0x4e   : > { %p1449_p0 = pneg %p1448_p12 }
  0x50   : > { %p1456_p8 = pnand %p1455_p4, %p1449_p0 }
  0x52   : > { %1459 = shalt.err (!%p1456_p8)
}
  0x53   : > { %1283 = dma.hbm_to_vmem [thread:$0]  (!%p1674_p11), %s2060_s6, 1024, %s278_s20, [#allocation9], %s1569_s19, %s1569_s19, %s1570_s21  }
  0x54   : > { %s1763_s26 = sadd.s32 1, %s1564_s30   ;;  %s33_s12 = sadd.s32 1, %s1560_s29 }
  0x55   : > { %s30_s16 = ssub.s32 %s1564_s30, %s1763_s26  ;;  %p40_p8 = scmp.ne.s32.totalorder %s1560_s29, %s1556_s28 }
  0x56   : > { %p31_p4 = scmp.eq.s32.totalorder %s30_s16, 0  ;;  %p41_p13 = scmp.eq.s32.totalorder %s1564_s30, 0 }
  0x57   : > { %p1295_p6 = scmp.lt.s32.totalorder %s1564_s30, 2  ;;  %p2075_p3 = scmp.eq.s32.totalorder %s1644_s9, 1 }
  0x58   : > { %s1773_s22 = scalar_select %p31_p4, %s1560_s29, %s33_s12  }
  0x59   : > { %p42_p10 = por %p41_p13, %p40_p8  ;;  %p1777_p5 = por %p2075_p3, %p40_p8 }
  0x5a   : > { %s294_s24 = sand.u32 1, %s1560_s29   ;;  %s1206_s25 = sshll.u32 %s1564_s30, 10 }
  0x5b   : > { %s1175_s20 = sshll.u32 %s294_s24, 6  ;;  %s1786_s10 = scalar_lea.hbm %s2054_s0, %s1206_s25 }
  0x5c   : > { %s298_s14 = scalar_lea.vmem [#allocation2], %s1175_s20  ;;  %p1788_p11 = pnand %p1295_p6, %p42_p10 }
  0x5d   : > { %s305_s17 = sshll.u32 %s298_s14, 4  ;;  %s1794_s18 = scalar_lea.sflag [#allocation3], %s294_s24  ;;  %s1792_s17 = int_to_ptr.vmem [resolvable:$true] %s305_s17 }
  0x5e   : > { %s1460_s27 = scalar_lea.hbm %s1786_s10, 1024  ;;  %p1462_p9 = pneg %p1788_p11 }
  0x5f   : > { %p1461_p7 = scmp.ne.s32.totalorder %s1786_s10, %s1460_s27  ;;  %s1465_s25 = scalar_lea.hbm %s2054_s0, 2048 }
  0x60   : > { %p1466_p1 = scmp.lt.u32.totalorder %s1786_s10, %s2054_s0  ;;  %p1467_p2 = scmp.lt.u32.totalorder %s1465_s25, %s1460_s27 }
  0x61   : > { %p1463_p12 = pnand %p1462_p9, %p1461_p7  ;;  %p1469_p8 = scmp.lt.u32.totalorder %s1460_s27, %s1786_s10 }
  0x62   : > { %p1468_p4 = por %p1467_p2, %p1466_p1 }
  0x63   : > { %p1464_p0 = pneg %p1463_p12 }
  0x64   : > { %p1470_p13 = por %p1469_p8, %p1468_p4 }
  0x66   : > { %p1471_p6 = pnand %p1470_p13, %p1464_p0 }
  0x68   : > { %1474 = shalt.err (!%p1471_p6)
}
  0x69   : > { %s1475_s24 = scalar_lea.vmem %s1792_s17, 1024  ;;  %s1571_s21 = smov [#allocation2]  }
  0x6a   : > { %p1476_p10 = scmp.ne.s32.totalorder %s1792_s17, %s1475_s24  ;;  %s1480_s14 = sshll.u32 %s1571_s21, 4  ;;  %s1481_s14 = int_to_ptr.vmem [resolvable:$false] %s1480_s14 }
  0x6b   : > { %s1482_s16 = scalar_lea.vmem %s1481_s14, 2048  ;;  %p1483_p12 = scmp.lt.s32.totalorder %s1792_s17, %s1481_s14 }
  0x6c   : > { %p1478_p3 = pnand %p1476_p10, %p1462_p9  ;;  %p1484_p1 = scmp.lt.s32.totalorder %s1482_s16, %s1475_s24 }
  0x6e   : > { %p1479_p7 = pneg %p1478_p3  ;;  %p1485_p2 = por %p1484_p1, %p1483_p12 }
  0x70   : > { %p1486_p4 = pnand %p1485_p2, %p1479_p7 }
  0x72   : > { %1489 = shalt.err (!%p1486_p4)
}
  0x73   : > { %s1572_s27 = smov 128   ;;  %s1573_s12 = smov 8  }
  0x74   : > { %1287 = dma.hbm_to_vmem [thread:$0]  (!%p1788_p11), %s1786_s10, 1024, %s1792_s17, %s1794_s18, %s1572_s27, %s1572_s27, %s1573_s12  }
  0x75   : > { %p2078_p9 = scmp.ne.s32.totalorder %s2072_s13, 0 }
  0x76   : > { %s1825_s25 = sand.u32 (!%p2078_p9), 1, %s1556_s28   ;;  %p2079_p0 = scmp.ne.s32.totalorder (!%p2078_p9), %s2069_s11, 0 }
  0x77   : > { %317 = sbr.rel (%p2078_p9) target bundleno = 1624 (0x658), region = 52  ;;  %s1179_s20 = sshll.u32 (!%p2078_p9), %s1825_s25, 6 }
  0x78   : > { %s320_s19 = scalar_lea.sflag (!%p2078_p9), [#allocation3], %s1825_s25  ;;  %s323_s24 = scalar_lea.vmem (!%p2078_p9), [#allocation2], %s1179_s20 }
  0x7e   : > { %1535 = dma.done.wait (%p2079_p0), %s320_s19, 1024  }
  0x7f   : > { %1537 = vsyncadd (%p2079_p0), %s320_s19, 4294966272  ;;  %p2080_p8 = scmp.eq.s32.totalorder %s1644_s9, 0 }
  0x81   : > { %1539 = dma.done.wait (%p2080_p8), [#allocation6], 512   ;;  %p2081_p11 = pmov %p2080_p8 }
  0x82   : > { %p2082_p13 = pmov %p2080_p8 }
  0x83   : > { %1541 = vsyncadd (%p2081_p11), [#allocation6], 4294966784 }
  0x84   : > { %1543 = dma.done.wait (%p2082_p13), [#allocation9], 1024   ;;  %p2083_p6 = pmov %p2080_p8 }
  0x85   : > { %v1841_v0 = vld [vmem:[%s323_s24] sm:$0xff]  ;;  %vm393_vm0 = vcmask 261120   ;;  %v1846_v2 = vld [vmem:[%s323_s24 + $0x10] sm:$0xff]  ;;  %v1850_v5 = vld [vmem:[%s323_s24 + $0x8] sm:$0xff]  ;;  %v426_v25 = vlaneseq  ;;  %vm460_vm1 = vcmask 1041409   ;;  %vm462_vm2 = vcmask 1042434  }
  0x86   : > { %1545 = vsyncadd (%p2083_p6), [#allocation9], 4294966272  ;;  %v1184_v1 = vld [vmem:[%s2055_s1] ss:$0 sm:$0xff]  ;;  %v1852_v6 = vld [vmem:[%s323_s24 + $0x18] sm:$0xff]  ;;  %vm464_vm3 = vcmask 1043459  }
  0x87   : > { %v385_v3 = vmul.f32 %v1184_v1, %v1841_v0  ;;  %v387_v4 = vmul.f32 %v1184_v1, %v1846_v2  ;;  %v1854_v7 = vld [vmem:[%s323_s24 + $0x20] sm:$0xff]  ;;  %v386_v8 = vmul.f32 %v1184_v1, %v1850_v5  ;;  %v388_v9 = vmul.f32 %v1184_v1, %v1852_v6  ;;  %v1859_v11 = vld [vmem:[%s323_s24 + $0x28] sm:$0xff]  ;;  %v1864_v15 = vld [vmem:[%s323_s24 + $0x30] sm:$0xff]  ;;  %s1183_s21 = sshll.u32 %s1825_s25, 3  ;;  %s1203_s27 = sshll.u32 %s1644_s9, 7 }
  0x88   : > { %v389_v10 = vmul.f32 %v1184_v1, %v1854_v7  ;;  %v390_v14 = vmul.f32 %v1184_v1, %v1859_v11  ;;  %v1866_v16 = vld [vmem:[%s323_s24 + $0x38] sm:$0xff]  ;;  %v391_v21 = vmul.f32 %v1184_v1, %v1864_v15  ;;  %v427_v26 = vand.u32 127, %v426_v25  ;;  %s367_s12 = scalar_lea.vmem [#allocation10], %s1183_s21  ;;  %s2010_s13 = scalar_lea.hbm %s2062_s8, %s1203_s27 }
  0x89   : > { %v394_v12 = vsel %vm393_vm0, %v385_v3, 0.0  ;;  %v400_v13 = vsel %vm393_vm0, %v387_v4, 0.0  ;;  %v397_v17 = vsel %vm393_vm0, %v386_v8, 0.0  ;;  %v403_v18 = vsel %vm393_vm0, %v388_v9, 0.0  ;;  %s1070_s20 = sshll.u32 %s367_s12, 4  ;;  %s1057_s10 = scalar_lea.sflag [#allocation4], %s1825_s25  ;;  %s2012_s20 = int_to_ptr.vmem [resolvable:$true] %s1070_s20 }
  0x8a   : > { %395 = vadd.xlane.f32.xlu0 %v394_v12  ;;  %401 = vadd.xlane.f32.xlu1 %v400_v13  ;;  %v406_v19 = vsel %vm393_vm0, %v389_v10, 0.0  ;;  %v409_v20 = vsel %vm393_vm0, %v390_v14, 0.0  ;;  %v392_v22 = vmul.f32 %v1184_v1, %v1866_v16  ;;  %v412_v23 = vsel %vm393_vm0, %v391_v21, 0.0  ;;  %s1490_s9 = scalar_lea.vmem %s2012_s20, 128  ;;  %s1577_s11 = smov [#allocation10]  }
  0x8b   : > { %v1876_v27 = vshrl.u32 %v426_v25, 7  ;;  %vm466_vm4 = vcmask 1044484   ;;  %vm468_vm5 = vcmask 1045509   ;;  %vm470_vm6 = vcmask 1046534   ;;  %p1491_p10 = scmp.ne.s32.totalorder %s2012_s20, %s1490_s9  ;;  %s1494_s17 = sshll.u32 %s1577_s11, 4  ;;  %s1495_s17 = int_to_ptr.vmem [resolvable:$false] %s1494_s17 }
  0x8c   : > { %v415_v24 = vsel %vm393_vm0, %v392_v22, 0.0  ;;  %vm472_vm7 = vcmask 1047559   ;;  %vm475_vm8 = vcmask 64512   ;;  %v1574_v53 = vmov 0   ;;  %s1496_s15 = scalar_lea.vmem %s1495_s17, 256  ;;  %p1497_p12 = scmp.lt.s32.totalorder %s2012_s20, %s1495_s17 }
  0x8d   : > { %v1879_v30 = vsub.s32 %v427_v26, %v1876_v27  ;;  %1343 = vset.pattern.permute.xlu0 %v1574_v53  ;;  %1342 = vset.pattern.permute.xlu1 %v1574_v53  ;;  %v482_v54 = vsub.s32 0, %v1876_v27  ;;  %v486_v55 = vsub.s32 1, %v1876_v27  ;;  %v490_v56 = vsub.s32 2, %v1876_v27  ;;  %p1492_p3 = pnand %p1491_p10, %p1777_p5  ;;  %p1498_p1 = scmp.lt.s32.totalorder %s1496_s15, %s1490_s9 }
  0x8e   : > { %398 = vadd.xlane.f32.xlu0 %v397_v17  ;;  %404 = vadd.xlane.f32.xlu1 %v403_v18  ;;  %v494_v57 = vsub.s32 3, %v1876_v27  ;;  %v498_v62 = vsub.s32 4, %v1876_v27  ;;  %v502_v10 = vsub.s32 5, %v1876_v27  ;;  %v506_v17 = vsub.s32 6, %v1876_v27 }
  0x8f   : > { %v510_v21 = vsub.s32 7, %v1876_v27  ;;  %vm1576_vm9 = vmmov 0   ;;  %p1493_p7 = pneg %p1492_p3  ;;  %p1499_p2 = por %p1498_p1, %p1497_p12 }
  0x91   : > { %p1500_p4 = pnand %p1499_p2, %p1493_p7 }
  0x92   : > { %407 = vadd.xlane.f32.xlu0 %v406_v19  ;;  %410 = vadd.xlane.f32.xlu1 %v409_v20 }
  0x96   : > { %413 = vadd.xlane.f32.xlu0 %v412_v23  ;;  %416 = vadd.xlane.f32.xlu1 %v415_v24 }
 0x117   : > { %v396_v28 = vpop.xlane.xlu0 %395  ;;  %v402_v29 = vpop.xlane.xlu1 %401 }
 0x118   : > { %v431_v33 = vrot.slane %v396_v28, %v1879_v30  ;;  %v439_v36 = vrot.slane %v402_v29, %v1879_v30 }
 0x11b   : > { %v399_v31 = vpop.xlane.xlu0 %398  ;;  %v405_v32 = vpop.xlane.xlu1 %404 }
 0x11c   : > { %v435_v34 = vrot.slane %v399_v31, %v1879_v30  ;;  %v443_v35 = vrot.slane %v405_v32, %v1879_v30 }
 0x11e   : > { %v461_v37 = vsel %vm460_vm1, %v435_v34, %v431_v33 }
 0x11f   : > { %v463_v38 = vsel %vm462_vm2, %v439_v36, %v461_v37  ;;  %v408_v39 = vpop.xlane.xlu0 %407  ;;  %v411_v40 = vpop.xlane.xlu1 %410 }
 0x120   : > { %v465_v41 = vsel %vm464_vm3, %v443_v35, %v463_v38  ;;  %v447_v42 = vrot.slane %v408_v39, %v1879_v30  ;;  %v451_v43 = vrot.slane %v411_v40, %v1879_v30 }
 0x122   : > { %v467_v44 = vsel %vm466_vm4, %v447_v42, %v465_v41 }
 0x123   : > { %v414_v45 = vpop.xlane.xlu0 %413  ;;  %v417_v46 = vpop.xlane.xlu1 %416  ;;  %v469_v49 = vsel %vm468_vm5, %v451_v43, %v467_v44 }
 0x124   : > { %v455_v47 = vrot.slane %v414_v45, %v1879_v30  ;;  %v459_v48 = vrot.slane %v417_v46, %v1879_v30 }
 0x126   : > { %v471_v50 = vsel %vm470_vm6, %v455_v47, %v469_v49 }
 0x127   : > { %v473_v51 = vsel %vm472_vm7, %v459_v48, %v471_v50 }
 0x128   : > { %v476_v52 = vsel %vm475_vm8, %v473_v51, -inf }
 0x129   : > { %477 = vmax.xlane.f32.xlu0 %v476_v52 }
 0x1b6   : > { %v478_v58 = vpop.xlane.xlu0 %477 }
 0x1b7   : > { %v483_v59 = vrot.slane %v478_v58, %v482_v54  ;;  %v487_v60 = vrot.slane %v478_v58, %v486_v55  ;;  %v491_v61 = vrot.slane %v478_v58, %v490_v56  ;;  %v495_v63 = vrot.slane %v478_v58, %v494_v57 }
 0x1b8   : > { %v499_v12 = vrot.slane %v478_v58, %v498_v62  ;;  %v503_v18 = vrot.slane %v478_v58, %v502_v10  ;;  %v507_v22 = vrot.slane %v478_v58, %v506_v17 }
 0x1b9   : > { %v520_v1 = vsub.f32 %v396_v28, %v483_v59  ;;  %v521_v3 = vsub.f32 %v399_v31, %v487_v60  ;;  %v522_v4 = vsub.f32 %v402_v29, %v491_v61  ;;  %v523_v13 = vsub.f32 %v405_v32, %v495_v63 }
 0x1ba   : > { %v524_v19 = vsub.f32 %v408_v39, %v499_v12  ;;  %v525_v23 = vsub.f32 %v411_v40, %v503_v18  ;;  %v511_v28 = vrot.slane %v478_v58, %v510_v21  ;;  %v526_v29 = vsub.f32 %v414_v45, %v507_v22 }
 0x1bb   : > { %v528_v8 = vmul.f32 1.442695, %v520_v1  ;;  %v530_v9 = vmul.f32 1.442695, %v521_v3  ;;  %v532_v14 = vmul.f32 1.442695, %v522_v4 }
 0x1bc   : > { %v534_v20 = vmul.f32 1.442695, %v523_v13  ;;  %v536_v24 = vmul.f32 1.442695, %v524_v19  ;;  %v538_v31 = vmul.f32 1.442695, %v525_v23  ;;  %v527_v33 = vsub.f32 %v417_v46, %v511_v28 }
 0x1bd   : > { %1356 = vpow2.f32 %v528_v8  ;;  %v540_v34 = vmul.f32 1.442695, %v526_v29 }
 0x1be   : > { %1358 = vpow2.f32 %v530_v9  ;;  %v542_v36 = vmul.f32 1.442695, %v527_v33 }
 0x1bf   : > { %1360 = vpow2.f32 %v532_v14 }
 0x1c0   : > { %1362 = vpow2.f32 %v534_v20 }
 0x1c1   : > { %1364 = vpow2.f32 %v536_v24 }
 0x1c2   : > { %1366 = vpow2.f32 %v538_v31 }
 0x1c3   : > { %1368 = vpow2.f32 %v540_v34 }
 0x1c4   : > { %1370 = vpow2.f32 %v542_v36 }
 0x1c7   : > { %v1357_v25 = vpop.eup %1356 }
 0x1c8   : > { %v1359_v26 = vpop.eup %1358  ;;  %553 = vperm.xlu1 %1342, %v1357_v25  }
 0x1c9   : > { %556 = vperm.xlu0 %1343, %v1359_v26   ;;  %v1361_v32 = vpop.eup %1360 }
 0x1ca   : > { %v1363_v35 = vpop.eup %1362 }
 0x1cb   : > { %v1365_v37 = vpop.eup %1364 }
 0x1cc   : > { %559 = vperm.xlu1 %1342, %v1361_v32   ;;  %v1367_v38 = vpop.eup %1366 }
 0x1cd   : > { %v1369_v39 = vpop.eup %1368 }
 0x1ce   : > { %v1371_v40 = vpop.eup %1370 }
 0x1d0   : > { %562 = vperm.xlu1 %1342, %v1363_v35  }
 0x1d4   : > { %565 = vperm.xlu1 %1342, %v1365_v37  }
 0x1d8   : > { %568 = vperm.xlu1 %1342, %v1367_v38  }
 0x1dc   : > { %571 = vperm.xlu1 %1342, %v1369_v39  }
 0x1e0   : > { %574 = vperm.xlu1 %1342, %v1371_v40  }
 0x247   : > { %v554_v41 = vpop.permute.xlu1 %553 }
 0x248   : > { %v557_v45 = vpop.permute.xlu0 %556  ;;  %v579_v48 = vrot.slane %v554_v41, %v1879_v30 }
 0x249   : > { %v583_v47 = vrot.slane %v557_v45, %v1879_v30 }
 0x24b   : > { %v560_v42 = vpop.permute.xlu1 %559  ;;  %v608_v53 = vsel %vm460_vm1, %v583_v47, %v579_v48 }
 0x24c   : > { %v587_v49 = vrot.slane %v560_v42, %v1879_v30 }
 0x24e   : > { %v609_v59 = vsel %vm462_vm2, %v587_v49, %v608_v53 }
 0x24f   : > { %v563_v43 = vpop.permute.xlu1 %562 }
 0x250   : > { %v591_v50 = vrot.slane %v563_v43, %v1879_v30 }
 0x252   : > { %v610_v61 = vsel %vm464_vm3, %v591_v50, %v609_v59 }
 0x253   : > { %v566_v44 = vpop.permute.xlu1 %565 }
 0x254   : > { %v595_v51 = vrot.slane %v566_v44, %v1879_v30 }
 0x256   : > { %v611_v63 = vsel %vm466_vm4, %v595_v51, %v610_v61 }
 0x257   : > { %v569_v46 = vpop.permute.xlu1 %568 }
 0x258   : > { %v599_v58 = vrot.slane %v569_v46, %v1879_v30 }
 0x25a   : > { %v612_v3 = vsel %vm468_vm5, %v599_v58, %v611_v63 }
 0x25b   : > { %v572_v52 = vpop.permute.xlu1 %571 }
 0x25c   : > { %v603_v60 = vrot.slane %v572_v52, %v1879_v30 }
 0x25e   : > { %v613_v8 = vsel %vm470_vm6, %v603_v60, %v612_v3 }
 0x25f   : > { %v575_v1 = vpop.permute.xlu1 %574 }
 0x260   : > { %v607_v4 = vrot.slane %v575_v1, %v1879_v30 }
 0x262   : > { %v614_v9 = vsel %vm472_vm7, %v607_v4, %v613_v8 }
 0x263   : > { %v616_v12 = vsel %vm475_vm8, %v614_v9, 0.0 }
 0x264   : > { %617 = vadd.xlane.f32.xlu1 %v616_v12 }
 0x2f1   : > { %v618_v13 = vpop.xlane.xlu1 %617 }
 0x2f2   : > { %1372 = vrcp.f32 %v618_v13 }
 0x2fc   : > { %v1373_v14 = vpop.eup %1372 }
 0x2fd   : > { %v624_v18 = vrot.slane %v1373_v14, %v482_v54  ;;  %v628_v20 = vrot.slane %v1373_v14, %v486_v55  ;;  %v632_v30 = vrot.slane %v1373_v14, %v490_v56  ;;  %v636_v24 = vrot.slane %v1373_v14, %v494_v57 }
 0x2fe   : > { %v640_v29 = vrot.slane %v1373_v14, %v498_v62  ;;  %v644_v55 = vrot.slane %v1373_v14, %v502_v10  ;;  %v648_v56 = vrot.slane %v1373_v14, %v506_v17  ;;  %v652_v57 = vrot.slane %v1373_v14, %v510_v21  ;;  %v1345_v10 = vld [vmem:[#allocation5 + $0x8] sm:$0xff]  }
 0x2ff   : > { %v661_v19 = vmul.f32 %v1357_v25, %v624_v18  ;;  %v662_v22 = vmul.f32 %v1359_v26, %v628_v20  ;;  %v663_v23 = vmul.f32 %v1361_v32, %v632_v30  ;;  %v664_v28 = vmul.f32 %v1363_v35, %v636_v24  ;;  %v1344_v32 = vld [vmem:[#allocation5] sm:$0xff]  }
 0x300   : > { %v665_v54 = vmul.f32 %v1365_v37, %v640_v29  ;;  %v666_v25 = vmul.f32 %v1367_v38, %v644_v55  ;;  %v667_v26 = vmul.f32 %v1369_v39, %v648_v56  ;;  %v668_v31 = vmul.f32 %v1371_v40, %v652_v57 }
 0x301   : > { %671 = vperm.xlu0 %1343, %v661_v19   ;;  %v1575_v62 = vmov 0.0  }
 0x302   : > { %1222 = vmatprep.subr.bf16.mxu1 %v1575_v62  ;;  %1226 = vmatprep.mubr.msk.bf16.mxu1 %vm1576_vm9, %v1575_v62 }
 0x303   : > { %1223 = vmatpush3.bf16.msra.mxu1 %v1344_v32  ;;  %1238 = vmatprep.subr.bf16.mxu0 %v1575_v62 }
 0x304   : > { %1224 = vmatprep.subr.bf16.mxu1 %v1575_v62  ;;  %1254 = vmatprep.mubr.msk.bf16.mxu0 %vm1576_vm9, %v1575_v62 }
 0x305   : > { %676 = vperm.xlu0 %1343, %v662_v22  }
 0x307   : > { %1225 = vmatpush3.bf16.msra.mxu1 %v1345_v10 }
 0x308   : > { %1230 = vmatprep.subr.bf16.mxu1 %v1575_v62 }
 0x309   : > { %681 = vperm.xlu0 %1343, %v663_v23  }
 0x30d   : > { %686 = vperm.xlu0 %1343, %v664_v28  }
 0x311   : > { %691 = vperm.xlu0 %1343, %v665_v54  }
 0x315   : > { %696 = vperm.xlu0 %1343, %v666_v25  }
 0x319   : > { %701 = vperm.xlu0 %1343, %v667_v26  }
 0x31d   : > { %706 = vperm.xlu0 %1343, %v668_v31  }
 0x380   : > { %v672_v27 = vpop.permute.xlu0 %671 }
 0x381   : > { %v709_v21 = vmul.f32 %v672_v27, %v1841_v0 }
 0x383   : > { %v717_v36 = vsel %vm393_vm0, %v709_v21, 0.0 }
 0x384   : > { %v677_v17 = vpop.permute.xlu0 %676  ;;  %v718_v40 = vrot.slane %v717_v36, 4 }
 0x385   : > { %v710_v33 = vmul.f32 %v677_v17, %v1850_v5 }
 0x386   : > { %v719_v5 = vadd.f32 %v718_v40, %v717_v36 }
 0x387   : > { %v724_v34 = vsel %vm393_vm0, %v710_v33, 0.0 }
 0x388   : > { %v682_v35 = vpop.permute.xlu0 %681  ;;  %v725_v38 = vrot.slane %v724_v34, 4  ;;  %v720_v52 = vrot.slane %v719_v5, 2 }
 0x389   : > { %v711_v37 = vmul.f32 %v682_v35, %v1846_v2 }
 0x38a   : > { %v726_v44 = vadd.f32 %v725_v38, %v724_v34  ;;  %v721_v3 = vadd.f32 %v720_v52, %v719_v5 }
 0x38b   : > { %v731_v39 = vsel %vm393_vm0, %v711_v37, 0.0 }
 0x38c   : > { %v732_v41 = vrot.slane %v731_v39, 4  ;;  %v687_v42 = vpop.permute.xlu0 %686  ;;  %v727_v49 = vrot.slane %v726_v44, 2  ;;  %v722_v22 = vrot.slane %v721_v3, 1 }
 0x38d   : > { %v712_v43 = vmul.f32 %v687_v42, %v1852_v6 }
 0x38e   : > { %v733_v45 = vadd.f32 %v732_v41, %v731_v39  ;;  %v728_v60 = vadd.f32 %v727_v49, %v726_v44  ;;  %v723_v26 = vadd.f32 %v722_v22, %v721_v3  ;;  %v1347_v3 = vld [vmem:[#allocation7 + $0x8] sm:$0xff]  }
 0x38f   : > { %v738_v0 = vsel %vm393_vm0, %v712_v43, 0.0  ;;  %v1351_v22 = vld [vmem:[#allocation8 + $0x18] sm:$0xff]  }
 0x390   : > { %v739_v46 = vrot.slane %v738_v0, 4  ;;  %v692_v47 = vpop.permute.xlu0 %691  ;;  %v734_v2 = vrot.slane %v733_v45, 2  ;;  %v729_v13 = vrot.slane %v728_v60, 1  ;;  %v773_v36 = vpack.c.bf16 %v723_v26, %v723_v26 }
 0x391   : > { %v713_v48 = vmul.f32 %v692_v47, %v1854_v7 }
 0x392   : > { %v740_v50 = vadd.f32 %v739_v46, %v738_v0  ;;  %v735_v63 = vadd.f32 %v734_v2, %v733_v45  ;;  %v730_v54 = vadd.f32 %v729_v13, %v728_v60  ;;  %v800_v45 = vunpack.c.l.b16 %v773_v36 }
 0x393   : > { %v745_v51 = vsel %vm393_vm0, %v713_v48, 0.0 }
 0x394   : > { %v741_v53 = vrot.slane %v740_v50, 2  ;;  %v746_v58 = vrot.slane %v745_v51, 4  ;;  %v697_v59 = vpop.permute.xlu0 %696  ;;  %v736_v18 = vrot.slane %v735_v63, 1  ;;  %v774_v17 = vpack.c.bf16 %v730_v54, %v730_v54 }
 0x395   : > { %v714_v6 = vmul.f32 %v697_v59, %v1859_v11 }
 0x396   : > { %v747_v61 = vadd.f32 %v746_v58, %v745_v51  ;;  %v742_v4 = vadd.f32 %v741_v53, %v740_v50  ;;  %v737_v25 = vadd.f32 %v736_v18, %v735_v63  ;;  %v801_v40 = vunpack.c.l.b16 %v774_v17  ;;  %v1346_v63 = vld [vmem:[#allocation7] sm:$0xff]  }
 0x397   : > { %v752_v1 = vsel %vm393_vm0, %v714_v6, 0.0 }
 0x398   : > { %v748_v8 = vrot.slane %v747_v61, 2  ;;  %v702_v7 = vpop.permute.xlu0 %701  ;;  %v753_v9 = vrot.slane %v752_v1, 4  ;;  %v743_v11 = vrot.slane %v742_v4, 1  ;;  %v775_v34 = vpack.c.bf16 %v737_v25, %v737_v25 }
 0x399   : > { %v715_v12 = vmul.f32 %v702_v7, %v1864_v15  ;;  %v808_v48 = vsel %vm460_vm1, %v801_v40, %v800_v45  ;;  %v1350_v7 = vld [vmem:[#allocation8 + $0x10] sm:$0xff]  }
 0x39a   : > { %v749_v14 = vadd.f32 %v748_v8, %v747_v61  ;;  %v754_v19 = vadd.f32 %v753_v9, %v752_v1  ;;  %v744_v57 = vadd.f32 %v743_v11, %v742_v4  ;;  %v802_v44 = vunpack.c.l.b16 %v775_v34  ;;  %v1348_v4 = vld [vmem:[#allocation8] sm:$0xff]   ;;  %v1349_v8 = vld [vmem:[#allocation8 + $0x8] sm:$0xff]  }
 0x39b   : > { %v759_v20 = vsel %vm393_vm0, %v715_v12, 0.0  ;;  %1239 = vmatpush3.bf16.msra.mxu0 %v1348_v4  ;;  %v1185_v9 = vld [vmem:[%s2056_s2] ss:$0 sm:$0xff] }
 0x39c   : > { %v760_v30 = vrot.slane %v759_v20, 4  ;;  %v707_v23 = vpop.permute.xlu0 %706  ;;  %v750_v24 = vrot.slane %v749_v14, 1  ;;  %v755_v28 = vrot.slane %v754_v19, 2  ;;  %v776_v37 = vpack.c.bf16 %v744_v57, %v744_v57  ;;  %1240 = vmatprep.subr.bf16.mxu0 %v1575_v62  ;;  %v1352_v11 = vld [vmem:[#allocation8 + $0x20] sm:$0xff]  }
 0x39d   : > { %v716_v29 = vmul.f32 %v707_v23, %v1866_v16  ;;  %v809_v2 = vsel %vm462_vm2, %v802_v44, %v808_v48  ;;  %v1354_v23 = vld [vmem:[#allocation8 + $0x30] sm:$0xff]  }
 0x39e   : > { %v761_v55 = vadd.f32 %v760_v30, %v759_v20  ;;  %v756_v56 = vadd.f32 %v755_v28, %v754_v19  ;;  %v751_v10 = vadd.f32 %v750_v24, %v749_v14  ;;  %v803_v0 = vunpack.c.l.b16 %v776_v37  ;;  %v1353_v30 = vld [vmem:[#allocation8 + $0x28] sm:$0xff]   ;;  %v1355_v24 = vld [vmem:[#allocation8 + $0x38] sm:$0xff]   ;;  %v1189_v28 = vld [vmem:[%s2059_s5] ss:$0 sm:$0xff] }
 0x39f   : > { %v766_v15 = vsel %vm393_vm0, %v716_v29, 0.0  ;;  %1241 = vmatpush3.bf16.msra.mxu0 %v1349_v8 }
 0x3a0   : > { %v762_v31 = vrot.slane %v761_v55, 2  ;;  %v767_v32 = vrot.slane %v766_v15, 4  ;;  %v757_v27 = vrot.slane %v756_v56, 1  ;;  %v777_v39 = vpack.c.bf16 %v751_v10, %v751_v10  ;;  %1242 = vmatprep.subr.bf16.mxu0 %v1575_v62  ;;  %v1193_v10 = vld [vmem:[%s2061_s7] ss:$0 sm:$0xff] }
 0x3a1   : > { %v810_v52 = vsel %vm464_vm3, %v803_v0, %v809_v2 }
 0x3a2   : > { %v763_v21 = vadd.f32 %v762_v31, %v761_v55  ;;  %v768_v33 = vadd.f32 %v767_v32, %v766_v15  ;;  %v758_v35 = vadd.f32 %v757_v27, %v756_v56  ;;  %v804_v47 = vunpack.c.l.b16 %v777_v39 }
 0x3a3   : > { %1243 = vmatpush3.bf16.msra.mxu0 %v1350_v7 }
 0x3a4   : > { %v764_v16 = vrot.slane %v763_v21, 1  ;;  %v769_v38 = vrot.slane %v768_v33, 2  ;;  %v778_v41 = vpack.c.bf16 %v758_v35, %v758_v35  ;;  %v811_v58 = vsel %vm466_vm4, %v804_v47, %v810_v52  ;;  %1244 = vmatprep.subr.bf16.mxu0 %v1575_v62 }
 0x3a6   : > { %v765_v42 = vadd.f32 %v764_v16, %v763_v21  ;;  %v770_v43 = vadd.f32 %v769_v38, %v768_v33  ;;  %v805_v49 = vunpack.c.l.b16 %v778_v41 }
 0x3a7   : > { %1245 = vmatpush3.bf16.msra.mxu0 %v1351_v22 }
 0x3a8   : > { %v779_v5 = vpack.c.bf16 %v765_v42, %v765_v42  ;;  %v771_v46 = vrot.slane %v770_v43, 1  ;;  %v812_v6 = vsel %vm468_vm5, %v805_v49, %v811_v58  ;;  %1246 = vmatprep.subr.bf16.mxu0 %v1575_v62 }
 0x3aa   : > { %v772_v50 = vadd.f32 %v771_v46, %v770_v43  ;;  %v806_v51 = vunpack.c.l.b16 %v779_v5 }
 0x3ab   : > { %1247 = vmatpush3.bf16.msra.mxu0 %v1352_v11 }
 0x3ac   : > { %v780_v53 = vpack.c.bf16 %v772_v50, %v772_v50  ;;  %v813_v60 = vsel %vm470_vm6, %v806_v51, %v812_v6  ;;  %1248 = vmatprep.subr.bf16.mxu0 %v1575_v62 }
 0x3ae   : > { %v807_v59 = vunpack.c.l.b16 %v780_v53 }
 0x3af   : > { %1249 = vmatpush3.bf16.msra.mxu0 %v1353_v30 }
 0x3b0   : > { %v814_v61 = vsel %vm472_vm7, %v807_v59, %v813_v60  ;;  %1250 = vmatprep.subr.bf16.mxu0 %v1575_v62 }
 0x3b1   : > { %v815_v1 = vpack.c.b16 %v814_v61, %v814_v61 }
 0x3b3   : > { %1227 = vmatmul.mubr.msk.bf16.vlgmr.msra.gmra.mrb[0].mxu1 %vm393_vm0, %v815_v1  ;;  %1251 = vmatpush3.bf16.msra.mxu0 %v1354_v23 }
 0x3b4   : > { %1231 = vmatpush3.bf16.msra.mxu1 %v1346_v63  ;;  %1234 = vmatprep.mubr.msk.bf16.mxu1 %vm1576_vm9, %v1575_v62 }
 0x3b5   : > { %1232 = vmatprep.subr.bf16.mxu1 %v1575_v62  ;;  %1252 = vmatprep.subr.bf16.mxu0 %v1575_v62 }
 0x3b7   : > { %1253 = vmatpush3.bf16.msra.mxu0 %v1355_v24 }
 0x3b8   : > { %1233 = vmatpush3.bf16.msra.mxu1 %v1347_v3 }
 0x486   : > { %v865_v12 = vpop.f32.mrb[0].mxu1 }
 0x487   : > { %v866_v13 = vadd.f32 %v1185_v9, %v865_v12  ;;  %v1228_v14 = vpop.f32.mrb[1].mxu1 }
 0x488   : > { %v868_v18 = vpop.f32.mrb[2].mxu1 }
 0x489   : > { %v871_v19 = vpack.c.bf16 %v866_v13, %v866_v13  ;;  %v1229_v20 = vpop.f32.mrb[3].mxu1 }
 0x48b   : > { %1235 = vmatmul.mubr.msk.bf16.vlgmr.msra.gmra.mrb[4].mxu1 %vm393_vm0, %v871_v19 }
 0x55e   : > { %v932_v29 = vpop.f32.mrb[4].mxu1 }
 0x55f   : > { %v933_v54 = vadd.f32 %v1189_v28, %v932_v29  ;;  %v1236_v55 = vpop.f32.mrb[5].mxu1 }
 0x560   : > { %v935_v25 = vpop.f32.mrb[6].mxu1 }
 0x561   : > { %v939_v56 = vmul.f32 0.70710677, %v933_v54  ;;  %v1237_v15 = vpop.f32.mrb[7].mxu1  ;;  %v938_v57 = vmul.f32 0.5, %v933_v54 }
 0x563   : > { %1374 = verf.f32 %v939_v56 }
 0x56d   : > { %v1375_v26 = vpop.eup %1374 }
 0x56e   : > { %v941_v31 = vadd.f32 1.0, %v1375_v26 }
 0x570   : > { %v942_v32 = vmul.f32 %v941_v31, %v938_v57 }
 0x572   : > { %v943_v62 = vpack.c.bf16 %v942_v32, %v942_v32 }
 0x574   : > { %1255 = vmatmul.mubr.bf16.vlgmr.msra.gmra.mrb[0].mxu0 %v943_v62 }
 0x647   : > { %v1049_v27 = vpop.f32.mrb[0].mxu0 }
 0x648   : > { %v1050_v17 = vadd.f32 %v1193_v10, %v1049_v27  ;;  %v1256_v21 = vpop.f32.mrb[1].mxu0 }
 0x649   : > { %v1052_v33 = vpop.f32.mrb[2].mxu0 }
 0x64a   : > { %1055 = vst [vmem:[%s367_s12] sm:$0xff] %v1050_v17  ;;  %v1257_v34 = vpop.f32.mrb[3].mxu0 }
 0x64b   : > { %1503 = shalt.err (!%p1500_p4)
}
 0x64c   : > { %s1504_s25 = scalar_lea.hbm %s2010_s13, 128  ;;  %s1508_s14 = scalar_lea.hbm %s2062_s8, 256 }
 0x64d   : > { %p1505_p9 = scmp.ne.s32.totalorder %s2010_s13, %s1504_s25  ;;  %p1509_p11 = scmp.lt.u32.totalorder %s2010_s13, %s2062_s8 }
 0x64e   : > { %p1510_p13 = scmp.lt.u32.totalorder %s1508_s14, %s1504_s25  ;;  %p1512_p10 = scmp.lt.u32.totalorder %s1504_s25, %s2010_s13 }
 0x64f   : > { %p1506_p0 = pnand %p1505_p9, %p1777_p5 }
 0x650   : > { %p1511_p6 = por %p1510_p13, %p1509_p11 }
 0x651   : > { %p1507_p8 = pneg %p1506_p0 }
 0x652   : > { %p1513_p3 = por %p1512_p10, %p1511_p6 }
 0x654   : > { %p1514_p7 = pnand %p1513_p3, %p1507_p8 }
 0x656   : > { %1517 = shalt.err (!%p1514_p7)
}
 0x657   : > { %1272 = dma.vmem_to_hbm [thread:$0]  (%p1777_p5), %s2012_s20, 128, %s2010_s13, %s1057_s10  }
 0x658 PF: > { %s2084_s12 = sld [smem:[#allocation15_spill]]  ;;  %s2085_s19 = sld [smem:[#allocation16_spill]] }
 0x659   : > { %p2087_p1 = scmp.ge.s32.totalorder %s1564_s30, 2 }
 0x65e   : > { %s1082_s24 = sand.u32 1, %s2084_s12   ;;  %p2086_p12 = scmp.ne.s32.totalorder %s2085_s19, 0 }
 0x65f   : > { %s1083_s9 = scalar_lea.sflag [#allocation4], %s1082_s24 }
 0x660   : > { %p1289_p2 = pnand %p2087_p1, %p2086_p12 }
 0x662   : > { %1547 = dma.done.wait (!%p1289_p2), %s1083_s9, 128  }
 0x663   : > { %1549 = vsyncadd (!%p1289_p2), %s1083_s9, 4294967168  ;;  %p23_p4 = scmp.ge.s32.totalorder %s1763_s26, 4   ;;  %s2088_s27 = smov %s1556_s28 }
 0x664   : > { %s2089_s28 = smov %s1560_s29  ;;  %s2090_s29 = smov %s1773_s22 }
 0x665   : > { %s2091_s30 = smov %s1763_s26  ;;  %25 = sbr.rel (!%p23_p4) target bundleno = 7 (0x7), region = 109 }
 0x66c   :  { %1088 = vsyncpa [#allocation3], 1 }
 0x66d   :  { %1090 = vsyncpa [#allocation3 + $0x1], 1 }
 0x66e   :  { %1091 = vsyncpa [#allocation6], 1 }
 0x66f   :  { %1092 = vsyncpa [#allocation9], 1 }
 0x670   :  { %1093 = vsyncpa [#allocation4], 1 }
 0x671   :  { %1095 = vsyncpa [#allocation4 + $0x1], 1 }

</bundles_post_ra>
